<compile_context>
chip_gen: v7x
topology: tpu7x:2x2x1
jax: 0.10.0
libtpu: 0.0.40
codegen_flags: <defaults>
</compile_context>

<pallas_src>
import functools

import jax
import jax.numpy as jnp
from jax.experimental import pallas as pl
from jax.experimental.pallas import tpu as pltpu


# ----------------------------------------------------------------------------
# helpers
# ----------------------------------------------------------------------------
def _round_up(x, m):
    return ((x + m - 1) // m) * m


def _pick_tile(dim, pref, align):
    """Bounded tile size.

    dim <= pref            -> the full dim (always a legal Pallas block).
    dim >  pref, divisible -> largest multiple of `align` <= pref dividing dim.
    otherwise              -> the multiple of `align` <= pref minimizing zero
                              padding (the caller pads the operand up).
    Never returns the raw full dimension for large dims, so a block can never
    silently exceed VMEM (v7x has only 64 MiB per TensorCore).
    """
    if dim <= pref:
        return dim
    best_t, best_padded = align, _round_up(dim, align)
    t = (pref // align) * align
    while t >= align:
        padded = _round_up(dim, t)
        if padded < best_padded or (padded == best_padded and t > best_t):
            best_t, best_padded = t, padded
        t -= align
    return best_t


def _row_blocks(batch, pref=256):
    """Row (batch) tile + padded row count for the small 2-D tail kernels."""
    tb = _pick_tile(batch, pref, 8)
    return tb, _round_up(batch, tb)


def _vmem_cap_bytes():
    """~75% of this generation's physical VMEM (v7x 64 MiB, v5e/v6e 128 MiB)."""
    try:
        info = pltpu.get_tpu_info()
        cap = getattr(info, "vmem_capacity_bytes", None)
        if cap:
            return int(0.75 * int(cap))
    except Exception:
        pass
    return 48 * 2**20                      # conservative default, safe on v7x


def _compiler_params(dimension_semantics, working_set_bytes):
    # ~2x the per-step working set (double buffering already counted by the
    # caller), floored at 16 MiB, capped per generation.
    limit = int(min(_vmem_cap_bytes(),
                    max(16 * 2**20, 2 * int(working_set_bytes))))
    return pltpu.CompilerParams(dimension_semantics=dimension_semantics,
                                vmem_limit_bytes=limit)


def _sigmoid(x):
    return 1.0 / (1.0 + jnp.exp(-x))


# ----------------------------------------------------------------------------
# tiled linear (matmul + bias [+ ReLU] [+ fused eltwise multiplier])
# ----------------------------------------------------------------------------
def _linear_kernel(*refs, activation, has_mul, compute_dtype):
    if has_mul:
        x_ref, w_ref, b_ref, mul_ref, o_ref, acc_ref = refs
    else:
        x_ref, w_ref, b_ref, o_ref, acc_ref = refs
        mul_ref = None

    @pl.when(pl.program_id(2) == 0)
    def _init():
        acc_ref[...] = jnp.zeros_like(acc_ref)

    # operands are cast in-register (no extra XLA convert pass in HBM)
    acc_ref[...] += jnp.dot(x_ref[...].astype(compute_dtype),
                            w_ref[...].astype(compute_dtype),
                            preferred_element_type=jnp.float32)

    @pl.when(pl.program_id(2) == pl.num_programs(2) - 1)
    def _finalize():
        y = acc_ref[...] + b_ref[...]
        if activation == "relu":
            y = jnp.maximum(y, 0.0)
        if mul_ref is not None:
            y = y * mul_ref[...]           # (tm,tn) or (1,tn) row broadcast
        o_ref[...] = y.astype(o_ref.dtype)


def pallas_linear(x, w, b, activation=None, mul=None,
                  out_dtype=jnp.float32, compute_dtype=jnp.bfloat16,
                  tm=256, tn=512, tk=512):
    """y = act(x @ w + b) [* mul].

    x:(M,K) w:(K,N) b:(N,) mul: None | (M,N) | (1,N) row-broadcast multiplier.
    Non-divisible dims are zero-padded to tile multiples and the result is
    sliced back.  bf16 MXU inputs (cast in-kernel), f32 accumulation.
    NOTE(v5e): if the K-stream DMA shows up exposed, reduce tn/tk toward 256
    and add pipeline_mode=pl.Buffered(3) on the weight BlockSpec.
    """
    M, K = x.shape
    Kw, N = w.shape
    assert K == Kw and b.shape[-1] == N
    has_mul = mul is not None
    mul_rows = 0
    if has_mul:
        assert mul.shape in ((M, N), (1, N)), mul.shape
        mul_rows = mul.shape[0]

    tm = _pick_tile(M, tm, 8)
    tn = _pick_tile(N, tn, 128)
    tk = _pick_tile(K, tk, 128)
    Mp, Np, Kp = _round_up(M, tm), _round_up(N, tn), _round_up(K, tk)

    if (Mp, Kp) != (M, K):
        x = jnp.pad(x, ((0, Mp - M), (0, Kp - K)))
    if (Kp, Np) != (K, N):
        w = jnp.pad(w, ((0, Kp - K), (0, Np - N)))
    b2 = b.reshape(1, N).astype(jnp.float32)
    if Np != N:
        b2 = jnp.pad(b2, ((0, 0), (0, Np - N)))

    in_specs = [
        pl.BlockSpec((tm, tk), lambda i, j, k: (i, k)),
        pl.BlockSpec((tk, tn), lambda i, j, k: (k, j)),
        pl.BlockSpec((1, tn), lambda i, j, k: (0, j)),
    ]
    operands = [x, w, b2]
    need_mul = 0
    if has_mul:
        mul = mul.astype(jnp.float32)
        if mul_rows == 1:
            if Np != N:
                mul = jnp.pad(mul, ((0, 0), (0, Np - N)))
            in_specs.append(pl.BlockSpec((1, tn), lambda i, j, k: (0, j)))
            need_mul = 2 * tn * 4
        else:
            if (Mp, Np) != (M, N):
                mul = jnp.pad(mul, ((0, Mp - M), (0, Np - N)))
            in_specs.append(pl.BlockSpec((tm, tn), lambda i, j, k: (i, j)))
            need_mul = 2 * tm * tn * 4
        operands.append(mul)

    xsz = jnp.dtype(x.dtype).itemsize
    wsz = jnp.dtype(w.dtype).itemsize
    osz = jnp.dtype(out_dtype).itemsize
    need = (2 * (tm * tk * xsz + tk * tn * wsz + tn * 4 + tm * tn * osz)
            + tm * tn * 4 + need_mul)
    cost = pl.CostEstimate(
        flops=int(2 * M * N * K), transcendentals=0,
        bytes_accessed=int(M * K * xsz + K * N * wsz + M * N * osz + N * 4))

    out = pl.pallas_call(
        functools.partial(_linear_kernel, activation=activation,
                          has_mul=has_mul, compute_dtype=compute_dtype),
        grid=(Mp // tm, Np // tn, Kp // tk),
        in_specs=in_specs,
        out_specs=pl.BlockSpec((tm, tn), lambda i, j, k: (i, j)),
        out_shape=jax.ShapeDtypeStruct((Mp, Np), out_dtype),
        scratch_shapes=[pltpu.VMEM((tm, tn), jnp.float32)],
        compiler_params=_compiler_params(
            ("parallel", "parallel", "arbitrary"), need),
        cost_estimate=cost,
    )(*operands)
    if (Mp, Np) != (M, N):
        out = out[:M, :N]
    return out


# ----------------------------------------------------------------------------
# fused top-down attention + adaptive average pool + ext_ctx
# ----------------------------------------------------------------------------
def _attention_kernel(v_ref, wv_ref, bv_ref, qw_ref, wr_ref, br_ref, sq_ref,
                      vemb_ref, ectx_ref):
    # TODO(synk): for very large HW*A this body should become a flash-style
    #             inner loop over spatial tiles with online softmax.
    tb, hw, c = v_ref.shape
    cdt = v_ref.dtype                                    # bf16 compute path
    v3 = v_ref[...]                                      # (tb, hw, C)

    # --- v-projection FCNet (Linear + ReLU): batch folded into the MXU M dim -
    vp = jnp.dot(v3.reshape(tb * hw, c), wv_ref[...].astype(cdt),
                 preferred_element_type=jnp.float32)     # (tb*hw, A)
    vp = jnp.maximum(vp + bv_ref[...], 0.0)
    vp3 = vp.reshape(tb, hw, vp.shape[-1]).astype(cdt)

    # --- attention logits; w_l pre-folded into qw.  The scalar logit bias b_l
    #     is dropped: softmax over the spatial axis is shift-invariant. -------
    s = jnp.einsum('bqa,bsa->bqs', qw_ref[...].astype(cdt), vp3,
                   preferred_element_type=jnp.float32)   # (tb, 1, hw)

    # --- softmax over the spatial (lane) axis, exact divide -------------------
    m = jnp.max(s, axis=-1, keepdims=True)
    e = jnp.exp(s - m)
    inv_den = 1.0 / jnp.sum(e, axis=-1, keepdims=True)   # (tb, 1, 1)

    # --- weighted sum + adaptive-avg-pool fused into ONE MXU contraction:
    #     rows = [softmax numerator ; ones]  ->  (tb, 2, hw) @ (tb, hw, C) ----
    p2 = jnp.concatenate([e, jnp.ones_like(e)], axis=1).astype(cdt)
    o2 = jnp.einsum('bqs,bsc->bqc', p2, v3,
                    preferred_element_type=jnp.float32)  # (tb, 2, C)
    vemb_ref[...] = (o2[:, 0:1, :] * inv_den).astype(vemb_ref.dtype)

    # --- ext_ctx = resize_img_flat(avg_pool(img)) * (agent_feat + place_feat) -
    vmean = (o2[:, 1, :] * (1.0 / hw)).astype(cdt)       # (tb, C)
    ec = jnp.dot(vmean, wr_ref[...].astype(cdt),
                 preferred_element_type=jnp.float32) + br_ref[...]
    ectx_ref[...] = (ec[:, None, :] * sq_ref[...]).astype(ectx_ref.dtype)


def _attn_batch_tile(batch, hw, c, itemsize):
    """Batch tile for the fused attention kernel.

    Folds enough batch rows into the v-projection's MXU M dimension (~512
    rows), caps the v block at ~4 MiB (it is double-buffered) and prefers
    >= 2 grid steps so both v7x TensorCores get work.  The batch dim is a
    leading block dim, so any divisor of `batch` is a legal block shape.
    """
    t = max(1, -(-512 // max(1, hw)))                          # ceil(512/hw)
    t = min(t, max(1, (4 << 20) // max(1, hw * c * itemsize)))
    t = min(t, batch)
    if batch >= 2:
        t = min(t, max(1, batch // 2))
    while batch % t:
        t -= 1
    return max(1, t)


def pallas_attention(v, w_vproj, b_vproj, qw, w_resize, b_resize, soft_query,
                     out_dtype=jnp.float32):
    """v:(B,HW,C) w_vproj:(C,A) b_vproj:(A,) qw:(B,A)=q_proj*w_l
    w_resize:(C,F) b_resize:(F,) soft_query:(B,F)=agent_feat+place_feat
    -> v_emb:(B,C), ext_ctx:(B,F)."""
    B, HW, C = v.shape
    Cw, A = w_vproj.shape
    _, F = w_resize.shape
    assert Cw == C and qw.shape == (B, A) and soft_query.shape == (B, F)

    vsz = jnp.dtype(v.dtype).itemsize
    wsz = jnp.dtype(w_vproj.dtype).itemsize
    tb = _attn_batch_tile(B, HW, C, vsz)

    qw3 = qw.reshape(B, 1, A).astype(jnp.float32)
    sq3 = soft_query.reshape(B, 1, F).astype(jnp.float32)
    bv2 = b_vproj.reshape(1, A).astype(jnp.float32)
    br2 = b_resize.reshape(1, F).astype(jnp.float32)

    need = (2 * (tb * HW * C * vsz + C * A * wsz + A * 4 + tb * A * 4
                 + C * F * wsz + F * 4 + tb * F * 4
                 + tb * C * 4 + tb * F * 4)
            + tb * HW * A * 4)                  # f32 v-projection intermediate
    cost = pl.CostEstimate(
        flops=int(2 * B * HW * C * A + 2 * B * HW * A + 4 * B * HW * C
                  + 2 * B * C * F),
        transcendentals=int(B * HW),
        bytes_accessed=int(B * HW * C * vsz + (C * A + C * F) * wsz
                           + B * (A + F) * 4 + B * (C + F) * 4))

    vemb, ectx = pl.pallas_call(
        _attention_kernel,
        grid=(B // tb,),
        in_specs=[
            pl.BlockSpec((tb, HW, C), lambda i: (i, 0, 0)),
            pl.BlockSpec((C, A), lambda i: (0, 0)),
            pl.BlockSpec((1, A), lambda i: (0, 0)),
            pl.BlockSpec((tb, 1, A), lambda i: (i, 0, 0)),
            pl.BlockSpec((C, F), lambda i: (0, 0)),
            pl.BlockSpec((1, F), lambda i: (0, 0)),
            pl.BlockSpec((tb, 1, F), lambda i: (i, 0, 0)),
        ],
        out_specs=[
            pl.BlockSpec((tb, 1, C), lambda i: (i, 0, 0)),
            pl.BlockSpec((tb, 1, F), lambda i: (i, 0, 0)),
        ],
        out_shape=[
            jax.ShapeDtypeStruct((B, 1, C), out_dtype),
            jax.ShapeDtypeStruct((B, 1, F), out_dtype),
        ],
        compiler_params=_compiler_params(("parallel",), need),
        cost_estimate=cost,
    )(v, w_vproj, bv2, qw3, w_resize, br2, sq3)
    return vemb.reshape(B, C), ectx.reshape(B, F)


# ----------------------------------------------------------------------------
# fused tail #1: q_net + v_net + MFB (eltwise, signed sqrt, L2 normalize)
# ----------------------------------------------------------------------------
def _qv_mfb_kernel(q_ref, v_ref, wq_ref, bq_ref, wv_ref, bv_ref, o_ref, *,
                   compute_dtype):
    cdt = compute_dtype
    q_repr = jnp.dot(q_ref[...].astype(cdt), wq_ref[...].astype(cdt),
                     preferred_element_type=jnp.float32) + bq_ref[...]
    q_repr = jnp.maximum(q_repr, 0.0)
    v_repr = jnp.dot(v_ref[...].astype(cdt), wv_ref[...].astype(cdt),
                     preferred_element_type=jnp.float32) + bv_ref[...]
    v_repr = jnp.maximum(v_repr, 0.0)
    # MFB: eltwise mul (Dropout_C = identity at eval); sum-pool over the
    # size-1 trailing dim is an identity; signed sqrt; L2 normalize.
    y = q_repr * v_repr
    y = jnp.sqrt(jnp.maximum(y, 0.0)) - jnp.sqrt(jnp.maximum(-y, 0.0))
    nrm2 = jnp.sum(y * y, axis=-1, keepdims=True)
    o_ref[...] = (y * jax.lax.rsqrt(jnp.maximum(nrm2, 1e-24))).astype(o_ref.dtype)


def pallas_qv_mfb(q_emb, v_emb, w_q, b_q, w_v, b_v,
                  out_dtype=jnp.float32, compute_dtype=jnp.bfloat16):
    B, Dq = q_emb.shape
    Bv, Dv = v_emb.shape
    assert Bv == B
    Hq = w_q.shape[1]
    assert w_v.shape[1] == Hq
    tb, Bp = _row_blocks(B)
    if Bp != B:
        q_emb = jnp.pad(q_emb, ((0, Bp - B), (0, 0)))
        v_emb = jnp.pad(v_emb, ((0, Bp - B), (0, 0)))

    wsz = jnp.dtype(w_q.dtype).itemsize
    need = 2 * (tb * Dq * 4 + tb * Dv * 4 + Dq * Hq * wsz + Dv * Hq * wsz
                + 2 * Hq * 4 + tb * Hq * 4)

    out = pl.pallas_call(
        functools.partial(_qv_mfb_kernel, compute_dtype=compute_dtype),
        grid=(Bp // tb,),
        in_specs=[
            pl.BlockSpec((tb, Dq), lambda i: (i, 0)),
            pl.BlockSpec((tb, Dv), lambda i: (i, 0)),
            pl.BlockSpec((Dq, Hq), lambda i: (0, 0)),
            pl.BlockSpec((1, Hq), lambda i: (0, 0)),
            pl.BlockSpec((Dv, Hq), lambda i: (0, 0)),
            pl.BlockSpec((1, Hq), lambda i: (0, 0)),
        ],
        out_specs=pl.BlockSpec((tb, Hq), lambda i: (i, 0)),
        out_shape=jax.ShapeDtypeStruct((Bp, Hq), out_dtype),
        compiler_params=_compiler_params(("parallel",), need),
    )(q_emb, v_emb, w_q, b_q.reshape(1, Hq).astype(jnp.float32),
      w_v, b_v.reshape(1, Hq).astype(jnp.float32))
    return out[:B] if Bp != B else out


# ----------------------------------------------------------------------------
# fused tail #2: 2-step LSTM (feat_combiner) + lstm_proj2 + classifier
# ----------------------------------------------------------------------------
def _lstm_head_kernel(x0_ref, x1_ref, wih_ref, whh_ref, b_ref,
                      wp_ref, bp_ref, wc_ref, bc_ref, o_ref, *,
                      hidden, compute_dtype):
    cdt = compute_dtype
    H = hidden
    wih = wih_ref[...].astype(cdt)
    whh = whh_ref[...].astype(cdt)
    b = b_ref[...]                                   # (1, 4H) = b_ih + b_hh

    def step(x, h_prev, c_prev):                     # gate order i, f, g, o
        g = jnp.dot(x.astype(cdt), wih, preferred_element_type=jnp.float32) + b
        if h_prev is not None:
            g = g + jnp.dot(h_prev.astype(cdt), whh,
                            preferred_element_type=jnp.float32)
        i = _sigmoid(g[:, 0 * H:1 * H])
        f = _sigmoid(g[:, 1 * H:2 * H])
        gg = jnp.tanh(g[:, 2 * H:3 * H])
        o = _sigmoid(g[:, 3 * H:4 * H])
        c = i * gg if c_prev is None else f * c_prev + i * gg
        return o * jnp.tanh(c), c

    h, c = step(x0_ref[...], None, None)             # h0 = c0 = 0
    h, c = step(x1_ref[...], h, c)
    # lstm_proj2 + classifier (modeled as single Linear layers)
    p = jnp.dot(h.astype(cdt), wp_ref[...].astype(cdt),
                preferred_element_type=jnp.float32) + bp_ref[...]
    logits = jnp.dot(p.astype(cdt), wc_ref[...].astype(cdt),
                     preferred_element_type=jnp.float32) + bc_ref[...]
    o_ref[...] = logits.astype(o_ref.dtype)


def pallas_lstm_head(x0, x1, w_ih, w_hh, b_lstm, w_p, b_p, w_c, b_c,
                     out_dtype=jnp.float32, compute_dtype=jnp.bfloat16):
    B, D = x0.shape
    assert x1.shape == (B, D)
    Dw, H4 = w_ih.shape
    assert Dw == D and H4 % 4 == 0
    H = H4 // 4
    P = w_p.shape[1]
    N = w_c.shape[1]
    tb, Bp = _row_blocks(B)
    if Bp != B:
        x0 = jnp.pad(x0, ((0, Bp - B), (0, 0)))
        x1 = jnp.pad(x1, ((0, Bp - B), (0, 0)))

    wsz = jnp.dtype(w_ih.dtype).itemsize
    need = 2 * (2 * tb * D * 4 + D * H4 * wsz + H * H4 * wsz + H4 * 4
                + H * P * wsz + P * 4 + P * N * wsz + N * 4 + tb * N * 4)

    out = pl.pallas_call(
        functools.partial(_lstm_head_kernel, hidden=H,
                          compute_dtype=compute_dtype),
        grid=(Bp // tb,),
        in_specs=[
            pl.BlockSpec((tb, D), lambda i: (i, 0)),
            pl.BlockSpec((tb, D), lambda i: (i, 0)),
            pl.BlockSpec((D, H4), lambda i: (0, 0)),
            pl.BlockSpec((H, H4), lambda i: (0, 0)),
            pl.BlockSpec((1, H4), lambda i: (0, 0)),
            pl.BlockSpec((H, P), lambda i: (0, 0)),
            pl.BlockSpec((1, P), lambda i: (0, 0)),
            pl.BlockSpec((P, N), lambda i: (0, 0)),
            pl.BlockSpec((1, N), lambda i: (0, 0)),
        ],
        out_specs=pl.BlockSpec((tb, N), lambda i: (i, 0)),
        out_shape=jax.ShapeDtypeStruct((Bp, N), out_dtype),
        compiler_params=_compiler_params(("parallel",), need),
    )(x0, x1, w_ih, w_hh, b_lstm.reshape(1, H4).astype(jnp.float32),
      w_p, b_p.reshape(1, P).astype(jnp.float32),
      w_c, b_c.reshape(1, N).astype(jnp.float32))
    return out[:B] if Bp != B else out


# ----------------------------------------------------------------------------
# param preparation: store matmul weights in bf16 once (outside jit)
# ----------------------------------------------------------------------------
_MATMUL_WEIGHTS = ('w_agent_cls', 'w_place_cls', 'w_qc', 'w_conv', 'w_qproj',
                   'w_vproj', 'w_resize', 'w_qnet', 'w_vnet', 'w_ih', 'w_hh',
                   'w_proj2', 'w_cls')


def prepare_params(params, weight_dtype=jnp.bfloat16):
    """Cast MXU weight matrices to bf16 once; biases / embeddings stay f32."""
    out = dict(params)
    for k in _MATMUL_WEIGHTS:
        out[k] = params[k].astype(weight_dtype)
    return out


# ----------------------------------------------------------------------------
# full forward pass
# ----------------------------------------------------------------------------
def top_down_baseline_forward(params, v_org, agent_feat, place_feat):
    p = params
    B, Cin, H, W = v_org.shape

    # --- agent / place branch: classifier -> argmax -> embedding lookup -----
    agent_logits = pallas_linear(agent_feat, p['w_agent_cls'], p['b_agent_cls'])
    place_logits = pallas_linear(place_feat, p['w_place_cls'], p['b_place_cls'])
    agent_embd = jnp.take(p['agent_emb'], jnp.argmax(agent_logits, -1), axis=0)
    place_embd = jnp.take(p['place_emb'], jnp.argmax(place_logits, -1), axis=0)
    concat_query = jnp.concatenate([agent_embd, place_embd], axis=-1)

    # query_composer (FCNet Linear+ReLU); Dropout_C is identity at inference.
    q_emb = pallas_linear(concat_query, p['w_qc'], p['b_qc'], activation="relu")

    # --- convnet stand-in: 1x1 conv == per-pixel channel matmul -------------
    # TODO(synk): with a real backbone the NCHW->NHWC conversion and the
    #             tiny-K (K = Cin) contraction fold into the backbone itself.
    x_nhwc = jnp.transpose(v_org, (0, 2, 3, 1)).reshape(B * H * W, Cin)
    feat = pallas_linear(x_nhwc, p['w_conv'], p['b_conv'], activation="relu",
                         out_dtype=jnp.bfloat16)       # big activation in bf16
    C = feat.shape[-1]
    v = feat.reshape(B, H * W, C)    # == img_features.view(B,C,HW).permute(0,2,1)

    # --- v_att q-projection with the logits weight w_l folded in as a row mul
    qw = pallas_linear(q_emb, p['w_qproj'], p['b_qproj'], activation="relu",
                       mul=p['w_l'].reshape(1, -1))

    # --- fused: v-projection + attention (logits/softmax/weighted sum)
    #     + adaptive avg pool + ext_ctx = resize_img_flat(pool) * soft_query --
    soft_query = agent_feat + place_feat
    v_emb, ext_ctx = pallas_attention(v, p['w_vproj'], p['b_vproj'], qw,
                                      p['w_resize'], p['b_resize'], soft_query)

    # --- fused tail #1: q_net + v_net + MFB (eltwise, signed sqrt, L2 norm) --
    mfb_l2 = pallas_qv_mfb(q_emb, v_emb, p['w_qnet'], p['b_qnet'],
                           p['w_vnet'], p['b_vnet'])

    # --- fused tail #2: feat_combiner 2-step LSTM + lstm_proj2 + classifier --
    logits = pallas_lstm_head(mfb_l2, ext_ctx, p['w_ih'], p['w_hh'],
                              p['b_lstm'], p['w_proj2'], p['b_proj2'],
                              p['w_cls'], p['b_cls'])
    return logits


# ----------------------------------------------------------------------------
# demo
# ----------------------------------------------------------------------------
if __name__ == "__main__":
    key = jax.random.PRNGKey(0)

    B = 4
    Cin, H, W = 8, 8, 8          # image input (NCHW)
    C = 128                      # conv output channels
    FEAT = 128                   # agent / place feature dim
    N_AGENT, N_PLACE = 64, 64
    EMB = 64                     # embedding dim (concat -> 2*EMB)
    QDIM = 128                   # query_composer output
    A = 128                      # attention hidden (num_hid)
    HID = 128                    # q_net / v_net output (== FEAT so LSTM dims match)
    HL = 128                     # LSTM hidden size
    PROJ = 128                   # lstm_proj2 output
    N_VERBS = 256

    ks = jax.random.split(key, 32)

    def rnd(k, shape, scale=0.05):
        return scale * jax.random.normal(k, shape, dtype=jnp.float32)

    params_f32 = dict(
        w_agent_cls=rnd(ks[0], (FEAT, N_AGENT)), b_agent_cls=rnd(ks[1], (N_AGENT,)),
        w_place_cls=rnd(ks[2], (FEAT, N_PLACE)), b_place_cls=rnd(ks[3], (N_PLACE,)),
        agent_emb=rnd(ks[4], (N_AGENT, EMB)),
        place_emb=rnd(ks[5], (N_PLACE, EMB)),
        w_qc=rnd(ks[6], (2 * EMB, QDIM)), b_qc=rnd(ks[7], (QDIM,)),
        w_conv=rnd(ks[8], (Cin, C)), b_conv=rnd(ks[9], (C,)),
        w_resize=rnd(ks[10], (C, FEAT)), b_resize=rnd(ks[11], (FEAT,)),
        # v_att
        w_vproj=rnd(ks[12], (C, A)), b_vproj=rnd(ks[13], (A,)),
        w_qproj=rnd(ks[14], (QDIM, A)), b_qproj=rnd(ks[15], (A,)),
        w_l=rnd(ks[16], (A,)), b_l=rnd(ks[17], (1,)),
        # q_net / v_net
        w_qnet=rnd(ks[18], (QDIM, HID)), b_qnet=rnd(ks[19], (HID,)),
        w_vnet=rnd(ks[20], (C, HID)), b_vnet=rnd(ks[21], (HID,)),
        # feat_combiner LSTM (1 layer, combined bias b_ih + b_hh)
        w_ih=rnd(ks[22], (HID, 4 * HL)), w_hh=rnd(ks[23], (HL, 4 * HL)),
        b_lstm=rnd(ks[24], (4 * HL,)),
        # lstm_proj2 + classifier
        w_proj2=rnd(ks[25], (HL, PROJ)), b_proj2=rnd(ks[26], (PROJ,)),
        w_cls=rnd(ks[27], (PROJ, N_VERBS)), b_cls=rnd(ks[28], (N_VERBS,)),
    )
    params = prepare_params(params_f32)     # bf16-resident MXU weights (once)

    v_org = jax.random.normal(ks[29], (B, Cin, H, W), dtype=jnp.float32)
    agent_feat = jax.random.normal(ks[30], (B, FEAT), dtype=jnp.float32)
    place_feat = jax.random.normal(ks[31], (B, FEAT), dtype=jnp.float32)

    fwd = jax.jit(top_down_baseline_forward)
    logits = fwd(params, v_org, agent_feat, place_feat)
    jax.block_until_ready(logits)

    assert logits.shape == (B, N_VERBS), logits.shape
    assert bool(jnp.all(jnp.isfinite(logits)))
    print("KERNEL_OK")
</pallas_src>

<mosaic_0001>
module attributes {stable_mosaic.version = 11 : i64} {
  func.func @_linear_kernel(%arg0: i32, %arg1: i32, %arg2: i32, %arg3: memref<4x128xf32, #tpu.memory_space<vmem>>, %arg4: memref<128x64xbf16, #tpu.memory_space<vmem>>, %arg5: memref<1x64xf32, #tpu.memory_space<vmem>>, %arg6: memref<4x64xf32, #tpu.memory_space<vmem>>, %arg7: memref<4x64xf32, #tpu.memory_space<vmem>>) attributes {dimension_semantics = [#tpu.dimension_semantics<parallel>, #tpu.dimension_semantics<parallel>, #tpu.dimension_semantics<arbitrary>], iteration_bounds = array<i64: 1, 1, 1>, scalar_prefetch = 0 : i64, scratch_operands = 1 : i64, tpu.core_type = #tpu.core_type<tc>, window_params = [{transform_indices = @transform_0, window_bounds = array<i64: 4, 128>}, {transform_indices = @transform_1, window_bounds = array<i64: 128, 64>}, {transform_indices = @transform_2, window_bounds = array<i64: 1, 64>}, {transform_indices = @transform_3, window_bounds = array<i64: 4, 64>}]} {
    %c0_i32 = arith.constant 0 : i32
    %0 = arith.cmpi eq, %arg2, %c0_i32 : i32
    %1 = arith.extui %0 : i1 to i32
    %c0_i32_0 = arith.constant 0 : i32
    %2 = arith.cmpi ne, %1, %c0_i32_0 : i32
    scf.if %2 {
      %cst_10 = arith.constant 0.000000e+00 : f32
      %13 = vector.broadcast %cst_10 : f32 to vector<4x64xf32>
      %c0_11 = arith.constant 0 : index
      %c0_12 = arith.constant 0 : index
      %14 = vector.load %arg7[%c0_11, %c0_12] : memref<4x64xf32, #tpu.memory_space<vmem>>, vector<4x64xf32>
      tpu.vector_store %arg7[%c0_11, %c0_12], %13 {strides = array<i32>} : memref<4x64xf32, #tpu.memory_space<vmem>>, vector<4x64xf32>,
    } else {
    }
    %c0 = arith.constant 0 : index
    %c0_1 = arith.constant 0 : index
    %3 = vector.load %arg7[%c0, %c0_1] : memref<4x64xf32, #tpu.memory_space<vmem>>, vector<4x64xf32>
    %c0_2 = arith.constant 0 : index
    %c0_3 = arith.constant 0 : index
    %4 = vector.load %arg3[%c0_2, %c0_3] : memref<4x128xf32, #tpu.memory_space<vmem>>, vector<4x128xf32>
    %5 = arith.truncf %4 : vector<4x128xf32> to vector<4x128xbf16>
    %c0_4 = arith.constant 0 : index
    %c0_5 = arith.constant 0 : index
    %6 = vector.load %arg4[%c0_4, %c0_5] : memref<128x64xbf16, #tpu.memory_space<vmem>>, vector<128x64xbf16>
    %cst = arith.constant dense<0.000000e+00> : vector<4x64xf32>
    %7 = tpu.matmul %5, %6, %cst {dimension_numbers = #tpu.dot_dimension_numbers<[1], [0], [0], [1], [0, 0, 1, 1], [], []>} : vector<4x128xbf16>, vector<128x64xbf16>, vector<4x64xf32> -> vector<4x64xf32>
    %8 = arith.addf %3, %7 : vector<4x64xf32>
    %c0_6 = arith.constant 0 : index
    %c0_7 = arith.constant 0 : index
    %9 = vector.load %arg7[%c0_6, %c0_7] : memref<4x64xf32, #tpu.memory_space<vmem>>, vector<4x64xf32>
    tpu.vector_store %arg7[%c0_6, %c0_7], %8 {strides = array<i32>} : memref<4x64xf32, #tpu.memory_space<vmem>>, vector<4x64xf32>,
    %c0_i32_8 = arith.constant 0 : i32
    %10 = arith.cmpi eq, %arg2, %c0_i32_8 : i32
    %11 = arith.extui %10 : i1 to i32
    %c0_i32_9 = arith.constant 0 : i32
    %12 = arith.cmpi ne, %11, %c0_i32_9 : i32
    scf.if %12 {
      %c0_10 = arith.constant 0 : index
      %c0_11 = arith.constant 0 : index
      %13 = vector.load %arg7[%c0_10, %c0_11] : memref<4x64xf32, #tpu.memory_space<vmem>>, vector<4x64xf32>
      %c0_12 = arith.constant 0 : index
      %c0_13 = arith.constant 0 : index
      %14 = vector.load %arg5[%c0_12, %c0_13] : memref<1x64xf32, #tpu.memory_space<vmem>>, vector<1x64xf32>
      %15 = vector.broadcast %14 : vector<1x64xf32> to vector<4x64xf32>
      %16 = arith.addf %13, %15 : vector<4x64xf32>
      %c0_14 = arith.constant 0 : index
      %c0_15 = arith.constant 0 : index
      %17 = vector.load %arg6[%c0_14, %c0_15] : memref<4x64xf32, #tpu.memory_space<vmem>>, vector<4x64xf32>
      tpu.vector_store %arg6[%c0_14, %c0_15], %16 {strides = array<i32>} : memref<4x64xf32, #tpu.memory_space<vmem>>, vector<4x64xf32>,
    } else {
    }
    return
  }
  func.func @transform_0(%arg0: i32, %arg1: i32, %arg2: i32) -> (i32, i32) {
    %c0_i32 = arith.constant 0 : i32
    return %arg0, %arg2 : i32, i32
  }
  func.func @transform_1(%arg0: i32, %arg1: i32, %arg2: i32) -> (i32, i32) {
    %c0_i32 = arith.constant 0 : i32
    return %arg2, %arg1 : i32, i32
  }
  func.func @transform_2(%arg0: i32, %arg1: i32, %arg2: i32) -> (i32, i32) {
    %c0_i32 = arith.constant 0 : i32
    %c0_i32_0 = arith.constant 0 : i32
    return %c0_i32, %arg1 : i32, i32
  }
  func.func @transform_3(%arg0: i32, %arg1: i32, %arg2: i32) -> (i32, i32) {
    %c0_i32 = arith.constant 0 : i32
    return %arg0, %arg1 : i32, i32
  }
}

module attributes {stable_mosaic.version = 11 : i64} {
  func.func @_linear_kernel(%arg0: i32, %arg1: i32, %arg2: i32, %arg3: memref<4x128xf32, #tpu.memory_space<vmem>>, %arg4: memref<128x128xbf16, #tpu.memory_space<vmem>>, %arg5: memref<1x128xf32, #tpu.memory_space<vmem>>, %arg6: memref<4x128xf32, #tpu.memory_space<vmem>>, %arg7: memref<4x128xf32, #tpu.memory_space<vmem>>) attributes {dimension_semantics = [#tpu.dimension_semantics<parallel>, #tpu.dimension_semantics<parallel>, #tpu.dimension_semantics<arbitrary>], iteration_bounds = array<i64: 1, 1, 1>, scalar_prefetch = 0 : i64, scratch_operands = 1 : i64, tpu.core_type = #tpu.core_type<tc>, window_params = [{transform_indices = @transform_0, window_bounds = array<i64: 4, 128>}, {transform_indices = @transform_1, window_bounds = array<i64: 128, 128>}, {transform_indices = @transform_2, window_bounds = array<i64: 1, 128>}, {transform_indices = @transform_3, window_bounds = array<i64: 4, 128>}]} {
    %c0_i32 = arith.constant 0 : i32
    %0 = arith.cmpi eq, %arg2, %c0_i32 : i32
    %1 = arith.extui %0 : i1 to i32
    %c0_i32_0 = arith.constant 0 : i32
    %2 = arith.cmpi ne, %1, %c0_i32_0 : i32
    scf.if %2 {
      %cst_10 = arith.constant 0.000000e+00 : f32
      %13 = vector.broadcast %cst_10 : f32 to vector<4x128xf32>
      %c0_11 = arith.constant 0 : index
      %c0_12 = arith.constant 0 : index
      %14 = vector.load %arg7[%c0_11, %c0_12] : memref<4x128xf32, #tpu.memory_space<vmem>>, vector<4x128xf32>
      tpu.vector_store %arg7[%c0_11, %c0_12], %13 {strides = array<i32>} : memref<4x128xf32, #tpu.memory_space<vmem>>, vector<4x128xf32>,
    } else {
    }
    %c0 = arith.constant 0 : index
    %c0_1 = arith.constant 0 : index
    %3 = vector.load %arg7[%c0, %c0_1] : memref<4x128xf32, #tpu.memory_space<vmem>>, vector<4x128xf32>
    %c0_2 = arith.constant 0 : index
    %c0_3 = arith.constant 0 : index
    %4 = vector.load %arg3[%c0_2, %c0_3] : memref<4x128xf32, #tpu.memory_space<vmem>>, vector<4x128xf32>
    %5 = arith.truncf %4 : vector<4x128xf32> to vector<4x128xbf16>
    %c0_4 = arith.constant 0 : index
    %c0_5 = arith.constant 0 : index
    %6 = vector.load %arg4[%c0_4, %c0_5] : memref<128x128xbf16, #tpu.memory_space<vmem>>, vector<128x128xbf16>
    %cst = arith.constant dense<0.000000e+00> : vector<4x128xf32>
    %7 = tpu.matmul %5, %6, %cst {dimension_numbers = #tpu.dot_dimension_numbers<[1], [0], [0], [1], [0, 0, 1, 1], [], []>} : vector<4x128xbf16>, vector<128x128xbf16>, vector<4x128xf32> -> vector<4x128xf32>
    %8 = arith.addf %3, %7 : vector<4x128xf32>
    %c0_6 = arith.constant 0 : index
    %c0_7 = arith.constant 0 : index
    %9 = vector.load %arg7[%c0_6, %c0_7] : memref<4x128xf32, #tpu.memory_space<vmem>>, vector<4x128xf32>
    tpu.vector_store %arg7[%c0_6, %c0_7], %8 {strides = array<i32>} : memref<4x128xf32, #tpu.memory_space<vmem>>, vector<4x128xf32>,
    %c0_i32_8 = arith.constant 0 : i32
    %10 = arith.cmpi eq, %arg2, %c0_i32_8 : i32
    %11 = arith.extui %10 : i1 to i32
    %c0_i32_9 = arith.constant 0 : i32
    %12 = arith.cmpi ne, %11, %c0_i32_9 : i32
    scf.if %12 {
      %c0_10 = arith.constant 0 : index
      %c0_11 = arith.constant 0 : index
      %13 = vector.load %arg7[%c0_10, %c0_11] : memref<4x128xf32, #tpu.memory_space<vmem>>, vector<4x128xf32>
      %c0_12 = arith.constant 0 : index
      %c0_13 = arith.constant 0 : index
      %14 = vector.load %arg5[%c0_12, %c0_13] : memref<1x128xf32, #tpu.memory_space<vmem>>, vector<1x128xf32>
      %15 = vector.broadcast %14 : vector<1x128xf32> to vector<4x128xf32>
      %16 = arith.addf %13, %15 : vector<4x128xf32>
      %cst_14 = arith.constant 0.000000e+00 : f32
      %17 = vector.broadcast %cst_14 : f32 to vector<4x128xf32>
      %18 = arith.maximumf %16, %17 : vector<4x128xf32>
      %c0_15 = arith.constant 0 : index
      %c0_16 = arith.constant 0 : index
      %19 = vector.load %arg6[%c0_15, %c0_16] : memref<4x128xf32, #tpu.memory_space<vmem>>, vector<4x128xf32>
      tpu.vector_store %arg6[%c0_15, %c0_16], %18 {strides = array<i32>} : memref<4x128xf32, #tpu.memory_space<vmem>>, vector<4x128xf32>,
    } else {
    }
    return
  }
  func.func @transform_0(%arg0: i32, %arg1: i32, %arg2: i32) -> (i32, i32) {
    %c0_i32 = arith.constant 0 : i32
    return %arg0, %arg2 : i32, i32
  }
  func.func @transform_1(%arg0: i32, %arg1: i32, %arg2: i32) -> (i32, i32) {
    %c0_i32 = arith.constant 0 : i32
    return %arg2, %arg1 : i32, i32
  }
  func.func @transform_2(%arg0: i32, %arg1: i32, %arg2: i32) -> (i32, i32) {
    %c0_i32 = arith.constant 0 : i32
    %c0_i32_0 = arith.constant 0 : i32
    return %c0_i32, %arg1 : i32, i32
  }
  func.func @transform_3(%arg0: i32, %arg1: i32, %arg2: i32) -> (i32, i32) {
    %c0_i32 = arith.constant 0 : i32
    return %arg0, %arg1 : i32, i32
  }
}

module attributes {stable_mosaic.version = 11 : i64} {
  func.func @_linear_kernel(%arg0: i32, %arg1: i32, %arg2: i32, %arg3: memref<256x8xf32, #tpu.memory_space<vmem>>, %arg4: memref<8x128xbf16, #tpu.memory_space<vmem>>, %arg5: memref<1x128xf32, #tpu.memory_space<vmem>>, %arg6: memref<256x128xbf16, #tpu.memory_space<vmem>>, %arg7: memref<256x128xf32, #tpu.memory_space<vmem>>) attributes {dimension_semantics = [#tpu.dimension_semantics<parallel>, #tpu.dimension_semantics<parallel>, #tpu.dimension_semantics<arbitrary>], iteration_bounds = array<i64: 1, 1, 1>, scalar_prefetch = 0 : i64, scratch_operands = 1 : i64, tpu.core_type = #tpu.core_type<tc>, window_params = [{transform_indices = @transform_0, window_bounds = array<i64: 256, 8>}, {transform_indices = @transform_1, window_bounds = array<i64: 8, 128>}, {transform_indices = @transform_2, window_bounds = array<i64: 1, 128>}, {transform_indices = @transform_3, window_bounds = array<i64: 256, 128>}]} {
    %c0_i32 = arith.constant 0 : i32
    %0 = arith.cmpi eq, %arg2, %c0_i32 : i32
    %1 = arith.extui %0 : i1 to i32
    %c0_i32_0 = arith.constant 0 : i32
    %2 = arith.cmpi ne, %1, %c0_i32_0 : i32
    scf.if %2 {
      %cst_10 = arith.constant 0.000000e+00 : f32
      %13 = vector.broadcast %cst_10 : f32 to vector<256x128xf32>
      %c0_11 = arith.constant 0 : index
      %c0_12 = arith.constant 0 : index
      %14 = vector.load %arg7[%c0_11, %c0_12] : memref<256x128xf32, #tpu.memory_space<vmem>>, vector<256x128xf32>
      tpu.vector_store %arg7[%c0_11, %c0_12], %13 {strides = array<i32>} : memref<256x128xf32, #tpu.memory_space<vmem>>, vector<256x128xf32>,
    } else {
    }
    %c0 = arith.constant 0 : index
    %c0_1 = arith.constant 0 : index
    %3 = vector.load %arg7[%c0, %c0_1] : memref<256x128xf32, #tpu.memory_space<vmem>>, vector<256x128xf32>
    %c0_2 = arith.constant 0 : index
    %c0_3 = arith.constant 0 : index
    %4 = vector.load %arg3[%c0_2, %c0_3] : memref<256x8xf32, #tpu.memory_space<vmem>>, vector<256x8xf32>
    %5 = arith.truncf %4 : vector<256x8xf32> to vector<256x8xbf16>
    %c0_4 = arith.constant 0 : index
    %c0_5 = arith.constant 0 : index
    %6 = vector.load %arg4[%c0_4, %c0_5] : memref<8x128xbf16, #tpu.memory_space<vmem>>, vector<8x128xbf16>
    %cst = arith.constant dense<0.000000e+00> : vector<256x128xf32>
    %7 = tpu.matmul %5, %6, %cst {dimension_numbers = #tpu.dot_dimension_numbers<[1], [0], [0], [1], [0, 0, 1, 1], [], []>} : vector<256x8xbf16>, vector<8x128xbf16>, vector<256x128xf32> -> vector<256x128xf32>
    %8 = arith.addf %3, %7 : vector<256x128xf32>
    %c0_6 = arith.constant 0 : index
    %c0_7 = arith.constant 0 : index
    %9 = vector.load %arg7[%c0_6, %c0_7] : memref<256x128xf32, #tpu.memory_space<vmem>>, vector<256x128xf32>
    tpu.vector_store %arg7[%c0_6, %c0_7], %8 {strides = array<i32>} : memref<256x128xf32, #tpu.memory_space<vmem>>, vector<256x128xf32>,
    %c0_i32_8 = arith.constant 0 : i32
    %10 = arith.cmpi eq, %arg2, %c0_i32_8 : i32
    %11 = arith.extui %10 : i1 to i32
    %c0_i32_9 = arith.constant 0 : i32
    %12 = arith.cmpi ne, %11, %c0_i32_9 : i32
    scf.if %12 {
      %c0_10 = arith.constant 0 : index
      %c0_11 = arith.constant 0 : index
      %13 = vector.load %arg7[%c0_10, %c0_11] : memref<256x128xf32, #tpu.memory_space<vmem>>, vector<256x128xf32>
      %c0_12 = arith.constant 0 : index
      %c0_13 = arith.constant 0 : index
      %14 = vector.load %arg5[%c0_12, %c0_13] : memref<1x128xf32, #tpu.memory_space<vmem>>, vector<1x128xf32>
      %15 = vector.broadcast %14 : vector<1x128xf32> to vector<256x128xf32>
      %16 = arith.addf %13, %15 : vector<256x128xf32>
      %cst_14 = arith.constant 0.000000e+00 : f32
      %17 = vector.broadcast %cst_14 : f32 to vector<256x128xf32>
      %18 = arith.maximumf %16, %17 : vector<256x128xf32>
      %19 = arith.truncf %18 : vector<256x128xf32> to vector<256x128xbf16>
      %c0_15 = arith.constant 0 : index
      %c0_16 = arith.constant 0 : index
      %20 = vector.load %arg6[%c0_15, %c0_16] : memref<256x128xbf16, #tpu.memory_space<vmem>>, vector<256x128xbf16>
      tpu.vector_store %arg6[%c0_15, %c0_16], %19 {strides = array<i32>} : memref<256x128xbf16, #tpu.memory_space<vmem>>, vector<256x128xbf16>,
    } else {
    }
    return
  }
  func.func @transform_0(%arg0: i32, %arg1: i32, %arg2: i32) -> (i32, i32) {
    %c0_i32 = arith.constant 0 : i32
    return %arg0, %arg2 : i32, i32
  }
  func.func @transform_1(%arg0: i32, %arg1: i32, %arg2: i32) -> (i32, i32) {
    %c0_i32 = arith.constant 0 : i32
    return %arg2, %arg1 : i32, i32
  }
  func.func @transform_2(%arg0: i32, %arg1: i32, %arg2: i32) -> (i32, i32) {
    %c0_i32 = arith.constant 0 : i32
    %c0_i32_0 = arith.constant 0 : i32
    return %c0_i32, %arg1 : i32, i32
  }
  func.func @transform_3(%arg0: i32, %arg1: i32, %arg2: i32) -> (i32, i32) {
    %c0_i32 = arith.constant 0 : i32
    return %arg0, %arg1 : i32, i32
  }
}

module attributes {stable_mosaic.version = 11 : i64} {
  func.func @_linear_kernel(%arg0: i32, %arg1: i32, %arg2: i32, %arg3: memref<4x128xf32, #tpu.memory_space<vmem>>, %arg4: memref<128x128xbf16, #tpu.memory_space<vmem>>, %arg5: memref<1x128xf32, #tpu.memory_space<vmem>>, %arg6: memref<1x128xf32, #tpu.memory_space<vmem>>, %arg7: memref<4x128xf32, #tpu.memory_space<vmem>>, %arg8: memref<4x128xf32, #tpu.memory_space<vmem>>) attributes {dimension_semantics = [#tpu.dimension_semantics<parallel>, #tpu.dimension_semantics<parallel>, #tpu.dimension_semantics<arbitrary>], iteration_bounds = array<i64: 1, 1, 1>, scalar_prefetch = 0 : i64, scratch_operands = 1 : i64, tpu.core_type = #tpu.core_type<tc>, window_params = [{transform_indices = @transform_0, window_bounds = array<i64: 4, 128>}, {transform_indices = @transform_1, window_bounds = array<i64: 128, 128>}, {transform_indices = @transform_2, window_bounds = array<i64: 1, 128>}, {transform_indices = @transform_3, window_bounds = array<i64: 1, 128>}, {transform_indices = @transform_4, window_bounds = array<i64: 4, 128>}]} {
    %c0_i32 = arith.constant 0 : i32
    %0 = arith.cmpi eq, %arg2, %c0_i32 : i32
    %1 = arith.extui %0 : i1 to i32
    %c0_i32_0 = arith.constant 0 : i32
    %2 = arith.cmpi ne, %1, %c0_i32_0 : i32
    scf.if %2 {
      %cst_10 = arith.constant 0.000000e+00 : f32
      %13 = vector.broadcast %cst_10 : f32 to vector<4x128xf32>
      %c0_11 = arith.constant 0 : index
      %c0_12 = arith.constant 0 : index
      %14 = vector.load %arg8[%c0_11, %c0_12] : memref<4x128xf32, #tpu.memory_space<vmem>>, vector<4x128xf32>
      tpu.vector_store %arg8[%c0_11, %c0_12], %13 {strides = array<i32>} : memref<4x128xf32, #tpu.memory_space<vmem>>, vector<4x128xf32>,
    } else {
    }
    %c0 = arith.constant 0 : index
    %c0_1 = arith.constant 0 : index
    %3 = vector.load %arg8[%c0, %c0_1] : memref<4x128xf32, #tpu.memory_space<vmem>>, vector<4x128xf32>
    %c0_2 = arith.constant 0 : index
    %c0_3 = arith.constant 0 : index
    %4 = vector.load %arg3[%c0_2, %c0_3] : memref<4x128xf32, #tpu.memory_space<vmem>>, vector<4x128xf32>
    %5 = arith.truncf %4 : vector<4x128xf32> to vector<4x128xbf16>
    %c0_4 = arith.constant 0 : index
    %c0_5 = arith.constant 0 : index
    %6 = vector.load %arg4[%c0_4, %c0_5] : memref<128x128xbf16, #tpu.memory_space<vmem>>, vector<128x128xbf16>
    %cst = arith.constant dense<0.000000e+00> : vector<4x128xf32>
    %7 = tpu.matmul %5, %6, %cst {dimension_numbers = #tpu.dot_dimension_numbers<[1], [0], [0], [1], [0, 0, 1, 1], [], []>} : vector<4x128xbf16>, vector<128x128xbf16>, vector<4x128xf32> -> vector<4x128xf32>
    %8 = arith.addf %3, %7 : vector<4x128xf32>
    %c0_6 = arith.constant 0 : index
    %c0_7 = arith.constant 0 : index
    %9 = vector.load %arg8[%c0_6, %c0_7] : memref<4x128xf32, #tpu.memory_space<vmem>>, vector<4x128xf32>
    tpu.vector_store %arg8[%c0_6, %c0_7], %8 {strides = array<i32>} : memref<4x128xf32, #tpu.memory_space<vmem>>, vector<4x128xf32>,
    %c0_i32_8 = arith.constant 0 : i32
    %10 = arith.cmpi eq, %arg2, %c0_i32_8 : i32
    %11 = arith.extui %10 : i1 to i32
    %c0_i32_9 = arith.constant 0 : i32
    %12 = arith.cmpi ne, %11, %c0_i32_9 : i32
    scf.if %12 {
      %c0_10 = arith.constant 0 : index
      %c0_11 = arith.constant 0 : index
      %13 = vector.load %arg8[%c0_10, %c0_11] : memref<4x128xf32, #tpu.memory_space<vmem>>, vector<4x128xf32>
      %c0_12 = arith.constant 0 : index
      %c0_13 = arith.constant 0 : index
      %14 = vector.load %arg5[%c0_12, %c0_13] : memref<1x128xf32, #tpu.memory_space<vmem>>, vector<1x128xf32>
      %15 = vector.broadcast %14 : vector<1x128xf32> to vector<4x128xf32>
      %16 = arith.addf %13, %15 : vector<4x128xf32>
      %cst_14 = arith.constant 0.000000e+00 : f32
      %17 = vector.broadcast %cst_14 : f32 to vector<4x128xf32>
      %18 = arith.maximumf %16, %17 : vector<4x128xf32>
      %c0_15 = arith.constant 0 : index
      %c0_16 = arith.constant 0 : index
      %19 = vector.load %arg6[%c0_15, %c0_16] : memref<1x128xf32, #tpu.memory_space<vmem>>, vector<1x128xf32>
      %20 = vector.broadcast %19 : vector<1x128xf32> to vector<4x128xf32>
      %21 = arith.mulf %18, %20 : vector<4x128xf32>
      %c0_17 = arith.constant 0 : index
      %c0_18 = arith.constant 0 : index
      %22 = vector.load %arg7[%c0_17, %c0_18] : memref<4x128xf32, #tpu.memory_space<vmem>>, vector<4x128xf32>
      tpu.vector_store %arg7[%c0_17, %c0_18], %21 {strides = array<i32>} : memref<4x128xf32, #tpu.memory_space<vmem>>, vector<4x128xf32>,
    } else {
    }
    return
  }
  func.func @transform_0(%arg0: i32, %arg1: i32, %arg2: i32) -> (i32, i32) {
    %c0_i32 = arith.constant 0 : i32
    return %arg0, %arg2 : i32, i32
  }
  func.func @transform_1(%arg0: i32, %arg1: i32, %arg2: i32) -> (i32, i32) {
    %c0_i32 = arith.constant 0 : i32
    return %arg2, %arg1 : i32, i32
  }
  func.func @transform_2(%arg0: i32, %arg1: i32, %arg2: i32) -> (i32, i32) {
    %c0_i32 = arith.constant 0 : i32
    %c0_i32_0 = arith.constant 0 : i32
    return %c0_i32, %arg1 : i32, i32
  }
  func.func @transform_3(%arg0: i32, %arg1: i32, %arg2: i32) -> (i32, i32) {
    %c0_i32 = arith.constant 0 : i32
    %c0_i32_0 = arith.constant 0 : i32
    return %c0_i32, %arg1 : i32, i32
  }
  func.func @transform_4(%arg0: i32, %arg1: i32, %arg2: i32) -> (i32, i32) {
    %c0_i32 = arith.constant 0 : i32
    return %arg0, %arg1 : i32, i32
  }
}

module attributes {stable_mosaic.version = 11 : i64} {
  func.func @_attention_kernel(%arg0: i32, %arg1: memref<2x64x128xbf16, #tpu.memory_space<vmem>>, %arg2: memref<128x128xbf16, #tpu.memory_space<vmem>>, %arg3: memref<1x128xf32, #tpu.memory_space<vmem>>, %arg4: memref<2x1x128xf32, #tpu.memory_space<vmem>>, %arg5: memref<128x128xbf16, #tpu.memory_space<vmem>>, %arg6: memref<1x128xf32, #tpu.memory_space<vmem>>, %arg7: memref<2x1x128xf32, #tpu.memory_space<vmem>>, %arg8: memref<2x1x128xf32, #tpu.memory_space<vmem>>, %arg9: memref<2x1x128xf32, #tpu.memory_space<vmem>>) attributes {dimension_semantics = [#tpu.dimension_semantics<parallel>], iteration_bounds = array<i64: 2>, scalar_prefetch = 0 : i64, scratch_operands = 0 : i64, tpu.core_type = #tpu.core_type<tc>, window_params = [{transform_indices = @transform_0, window_bounds = array<i64: 2, 64, 128>}, {pipeline_mode = #tpu.pipeline_mode<synchronous>, transform_indices = @transform_1, window_bounds = array<i64: 128, 128>}, {pipeline_mode = #tpu.pipeline_mode<synchronous>, transform_indices = @transform_2, window_bounds = array<i64: 1, 128>}, {transform_indices = @transform_3, window_bounds = array<i64: 2, 1, 128>}, {pipeline_mode = #tpu.pipeline_mode<synchronous>, transform_indices = @transform_4, window_bounds = array<i64: 128, 128>}, {pipeline_mode = #tpu.pipeline_mode<synchronous>, transform_indices = @transform_5, window_bounds = array<i64: 1, 128>}, {transform_indices = @transform_6, window_bounds = array<i64: 2, 1, 128>}, {transform_indices = @transform_7, window_bounds = array<i64: 2, 1, 128>}, {transform_indices = @transform_8, window_bounds = array<i64: 2, 1, 128>}]} {
    %c0 = arith.constant 0 : index
    %c0_0 = arith.constant 0 : index
    %c0_1 = arith.constant 0 : index
    %0 = vector.load %arg1[%c0, %c0_0, %c0_1] : memref<2x64x128xbf16, #tpu.memory_space<vmem>>, vector<2x64x128xbf16>
    %1 = vector.shape_cast %0 : vector<2x64x128xbf16> to vector<128x128xbf16>
    %c0_2 = arith.constant 0 : index
    %c0_3 = arith.constant 0 : index
    %2 = vector.load %arg2[%c0_2, %c0_3] : memref<128x128xbf16, #tpu.memory_space<vmem>>, vector<128x128xbf16>
    %cst = arith.constant dense<0.000000e+00> : vector<128x128xf32>
    %3 = tpu.matmul %1, %2, %cst {dimension_numbers = #tpu.dot_dimension_numbers<[1], [0], [0], [1], [0, 0, 1, 1], [], []>} : vector<128x128xbf16>, vector<128x128xbf16>, vector<128x128xf32> -> vector<128x128xf32>
    %c0_4 = arith.constant 0 : index
    %c0_5 = arith.constant 0 : index
    %4 = vector.load %arg3[%c0_4, %c0_5] : memref<1x128xf32, #tpu.memory_space<vmem>>, vector<1x128xf32>
    %5 = vector.broadcast %4 : vector<1x128xf32> to vector<128x128xf32>
    %6 = arith.addf %3, %5 : vector<128x128xf32>
    %cst_6 = arith.constant 0.000000e+00 : f32
    %7 = vector.broadcast %cst_6 : f32 to vector<128x128xf32>
    %8 = arith.maximumf %6, %7 : vector<128x128xf32>
    %9 = vector.shape_cast %8 : vector<128x128xf32> to vector<2x64x128xf32>
    %10 = arith.truncf %9 : vector<2x64x128xf32> to vector<2x64x128xbf16>
    %c0_7 = arith.constant 0 : index
    %c0_8 = arith.constant 0 : index
    %c0_9 = arith.constant 0 : index
    %11 = vector.load %arg4[%c0_7, %c0_8, %c0_9] : memref<2x1x128xf32, #tpu.memory_space<vmem>>, vector<2x1x128xf32>
    %12 = arith.truncf %11 : vector<2x1x128xf32> to vector<2x1x128xbf16>
    "tpu.trace_start"() <{level = 10 : i32, message = "bqa,bsa->bqs"}> : () -> ()
    %cst_10 = arith.constant dense<0.000000e+00> : vector<2x1x64xf32>
    %13 = tpu.matmul %12, %10, %cst_10 {dimension_numbers = #tpu.dot_dimension_numbers<[2], [2], [1], [1], [0, 0, 0, 1, 1, 1], [0], [0]>} : vector<2x1x128xbf16>, vector<2x64x128xbf16>, vector<2x1x64xf32> -> vector<2x1x64xf32>
    "tpu.trace_stop"() : () -> ()
    %cst_11 = arith.constant dense<0xFF800000> : vector<2x1xf32>
    %14 = vector.multi_reduction <maximumf>, %13, %cst_11 [2] : vector<2x1x64xf32> to vector<2x1xf32>
    %15 = vector.shape_cast %14 : vector<2x1xf32> to vector<2x1x1xf32>
    %16 = vector.broadcast %15 : vector<2x1x1xf32> to vector<2x1x64xf32>
    %17 = arith.subf %13, %16 : vector<2x1x64xf32>
    %18 = math.exp %17 : vector<2x1x64xf32>
    %cst_12 = arith.constant dense<0.000000e+00> : vector<2x1xf32>
    %19 = vector.multi_reduction <add>, %18, %cst_12 [2] : vector<2x1x64xf32> to vector<2x1xf32>
    %20 = vector.shape_cast %19 : vector<2x1xf32> to vector<2x1x1xf32>
    %cst_13 = arith.constant 1.000000e+00 : f32
    %21 = vector.broadcast %cst_13 : f32 to vector<2x1x1xf32>
    %22 = arith.divf %21, %20 : vector<2x1x1xf32>
    %cst_14 = arith.constant 1.000000e+00 : f32
    %23 = vector.broadcast %cst_14 : f32 to vector<2x1x64xf32>
    %24 = tpu.concatenate %18, %23 in 1 : vector<2x1x64xf32>, vector<2x1x64xf32> -> vector<2x2x64xf32>
    %25 = arith.truncf %24 : vector<2x2x64xf32> to vector<2x2x64xbf16>
    "tpu.trace_start"() <{level = 10 : i32, message = "bqs,bsc->bqc"}> : () -> ()
    %cst_15 = arith.constant dense<0.000000e+00> : vector<2x2x128xf32>
    %26 = tpu.matmul %25, %0, %cst_15 {dimension_numbers = #tpu.dot_dimension_numbers<[2], [1], [1], [2], [0, 0, 0, 1, 1, 2], [0], [0]>} : vector<2x2x64xbf16>, vector<2x64x128xbf16>, vector<2x2x128xf32> -> vector<2x2x128xf32>
    "tpu.trace_stop"() : () -> ()
    %27 = vector.extract_strided_slice %26 {offsets = [0, 0, 0], sizes = [2, 1, 128], strides = [1, 1, 1]} : vector<2x2x128xf32> to vector<2x1x128xf32>
    %28 = vector.broadcast %22 : vector<2x1x1xf32> to vector<2x1x128xf32>
    %29 = arith.mulf %27, %28 : vector<2x1x128xf32>
    %c0_16 = arith.constant 0 : index
    %c0_17 = arith.constant 0 : index
    %c0_18 = arith.constant 0 : index
    %30 = vector.load %arg8[%c0_16, %c0_17, %c0_18] : memref<2x1x128xf32, #tpu.memory_space<vmem>>, vector<2x1x128xf32>
    tpu.vector_store %arg8[%c0_16, %c0_17, %c0_18], %29 {strides = array<i32>} : memref<2x1x128xf32, #tpu.memory_space<vmem>>, vector<2x1x128xf32>,
    %31 = vector.extract_strided_slice %26 {offsets = [0, 1, 0], sizes = [2, 1, 128], strides = [1, 1, 1]} : vector<2x2x128xf32> to vector<2x1x128xf32>
    %32 = vector.shape_cast %31 : vector<2x1x128xf32> to vector<2x128xf32>
    %cst_19 = arith.constant 1.562500e-02 : f32
    %33 = vector.broadcast %cst_19 : f32 to vector<2x128xf32>
    %34 = arith.mulf %32, %33 : vector<2x128xf32>
    %35 = arith.truncf %34 : vector<2x128xf32> to vector<2x128xbf16>
    %c0_20 = arith.constant 0 : index
    %c0_21 = arith.constant 0 : index
    %36 = vector.load %arg5[%c0_20, %c0_21] : memref<128x128xbf16, #tpu.memory_space<vmem>>, vector<128x128xbf16>
    %cst_22 = arith.constant dense<0.000000e+00> : vector<2x128xf32>
    %37 = tpu.matmul %35, %36, %cst_22 {dimension_numbers = #tpu.dot_dimension_numbers<[1], [0], [0], [1], [0, 0, 1, 1], [], []>} : vector<2x128xbf16>, vector<128x128xbf16>, vector<2x128xf32> -> vector<2x128xf32>
    %c0_23 = arith.constant 0 : index
    %c0_24 = arith.constant 0 : index
    %38 = vector.load %arg6[%c0_23, %c0_24] : memref<1x128xf32, #tpu.memory_space<vmem>>, vector<1x128xf32>
    %39 = vector.broadcast %38 : vector<1x128xf32> to vector<2x128xf32>
    %40 = arith.addf %37, %39 : vector<2x128xf32>
    %41 = vector.shape_cast %40 : vector<2x128xf32> to vector<2x1x128xf32>
    %c0_25 = arith.constant 0 : index
    %c0_26 = arith.constant 0 : index
    %c0_27 = arith.constant 0 : index
    %42 = vector.load %arg7[%c0_25, %c0_26, %c0_27] : memref<2x1x128xf32, #tpu.memory_space<vmem>>, vector<2x1x128xf32>
    %43 = arith.mulf %41, %42 : vector<2x1x128xf32>
    %c0_28 = arith.constant 0 : index
    %c0_29 = arith.constant 0 : index
    %c0_30 = arith.constant 0 : index
    %44 = vector.load %arg9[%c0_28, %c0_29, %c0_30] : memref<2x1x128xf32, #tpu.memory_space<vmem>>, vector<2x1x128xf32>
    tpu.vector_store %arg9[%c0_28, %c0_29, %c0_30], %43 {strides = array<i32>} : memref<2x1x128xf32, #tpu.memory_space<vmem>>, vector<2x1x128xf32>,
    return
  }
  func.func @transform_0(%arg0: i32) -> (i32, i32, i32) {
    %c0_i32 = arith.constant 0 : i32
    %c0_i32_0 = arith.constant 0 : i32
    %c0_i32_1 = arith.constant 0 : i32
    return %arg0, %c0_i32, %c0_i32_0 : i32, i32, i32
  }
  func.func @transform_1(%arg0: i32) -> (i32, i32) {
    %c0_i32 = arith.constant 0 : i32
    %c0_i32_0 = arith.constant 0 : i32
    %c0_i32_1 = arith.constant 0 : i32
    return %c0_i32, %c0_i32_0 : i32, i32
  }
  func.func @transform_2(%arg0: i32) -> (i32, i32) {
    %c0_i32 = arith.constant 0 : i32
    %c0_i32_0 = arith.constant 0 : i32
    %c0_i32_1 = arith.constant 0 : i32
    return %c0_i32, %c0_i32_0 : i32, i32
  }
  func.func @transform_3(%arg0: i32) -> (i32, i32, i32) {
    %c0_i32 = arith.constant 0 : i32
    %c0_i32_0 = arith.constant 0 : i32
    %c0_i32_1 = arith.constant 0 : i32
    return %arg0, %c0_i32, %c0_i32_0 : i32, i32, i32
  }
  func.func @transform_4(%arg0: i32) -> (i32, i32) {
    %c0_i32 = arith.constant 0 : i32
    %c0_i32_0 = arith.constant 0 : i32
    %c0_i32_1 = arith.constant 0 : i32
    return %c0_i32, %c0_i32_0 : i32, i32
  }
  func.func @transform_5(%arg0: i32) -> (i32, i32) {
    %c0_i32 = arith.constant 0 : i32
    %c0_i32_0 = arith.constant 0 : i32
    %c0_i32_1 = arith.constant 0 : i32
    return %c0_i32, %c0_i32_0 : i32, i32
  }
  func.func @transform_6(%arg0: i32) -> (i32, i32, i32) {
    %c0_i32 = arith.constant 0 : i32
    %c0_i32_0 = arith.constant 0 : i32
    %c0_i32_1 = arith.constant 0 : i32
    return %arg0, %c0_i32, %c0_i32_0 : i32, i32, i32
  }
  func.func @transform_7(%arg0: i32) -> (i32, i32, i32) {
    %c0_i32 = arith.constant 0 : i32
    %c0_i32_0 = arith.constant 0 : i32
    %c0_i32_1 = arith.constant 0 : i32
    return %arg0, %c0_i32, %c0_i32_0 : i32, i32, i32
  }
  func.func @transform_8(%arg0: i32) -> (i32, i32, i32) {
    %c0_i32 = arith.constant 0 : i32
    %c0_i32_0 = arith.constant 0 : i32
    %c0_i32_1 = arith.constant 0 : i32
    return %arg0, %c0_i32, %c0_i32_0 : i32, i32, i32
  }
}

module attributes {stable_mosaic.version = 11 : i64} {
  func.func @_qv_mfb_kernel(%arg0: i32, %arg1: memref<4x128xf32, #tpu.memory_space<vmem>>, %arg2: memref<4x128xf32, #tpu.memory_space<vmem>>, %arg3: memref<128x128xbf16, #tpu.memory_space<vmem>>, %arg4: memref<1x128xf32, #tpu.memory_space<vmem>>, %arg5: memref<128x128xbf16, #tpu.memory_space<vmem>>, %arg6: memref<1x128xf32, #tpu.memory_space<vmem>>, %arg7: memref<4x128xf32, #tpu.memory_space<vmem>>) attributes {dimension_semantics = [#tpu.dimension_semantics<parallel>], iteration_bounds = array<i64: 1>, scalar_prefetch = 0 : i64, scratch_operands = 0 : i64, tpu.core_type = #tpu.core_type<tc>, window_params = [{transform_indices = @transform_0, window_bounds = array<i64: 4, 128>}, {transform_indices = @transform_1, window_bounds = array<i64: 4, 128>}, {pipeline_mode = #tpu.pipeline_mode<synchronous>, transform_indices = @transform_2, window_bounds = array<i64: 128, 128>}, {pipeline_mode = #tpu.pipeline_mode<synchronous>, transform_indices = @transform_3, window_bounds = array<i64: 1, 128>}, {pipeline_mode = #tpu.pipeline_mode<synchronous>, transform_indices = @transform_4, window_bounds = array<i64: 128, 128>}, {pipeline_mode = #tpu.pipeline_mode<synchronous>, transform_indices = @transform_5, window_bounds = array<i64: 1, 128>}, {transform_indices = @transform_6, window_bounds = array<i64: 4, 128>}]} {
    %c0 = arith.constant 0 : index
    %c0_0 = arith.constant 0 : index
    %0 = vector.load %arg1[%c0, %c0_0] : memref<4x128xf32, #tpu.memory_space<vmem>>, vector<4x128xf32>
    %1 = arith.truncf %0 : vector<4x128xf32> to vector<4x128xbf16>
    %c0_1 = arith.constant 0 : index
    %c0_2 = arith.constant 0 : index
    %2 = vector.load %arg3[%c0_1, %c0_2] : memref<128x128xbf16, #tpu.memory_space<vmem>>, vector<128x128xbf16>
    %cst = arith.constant dense<0.000000e+00> : vector<4x128xf32>
    %3 = tpu.matmul %1, %2, %cst {dimension_numbers = #tpu.dot_dimension_numbers<[1], [0], [0], [1], [0, 0, 1, 1], [], []>} : vector<4x128xbf16>, vector<128x128xbf16>, vector<4x128xf32> -> vector<4x128xf32>
    %c0_3 = arith.constant 0 : index
    %c0_4 = arith.constant 0 : index
    %4 = vector.load %arg4[%c0_3, %c0_4] : memref<1x128xf32, #tpu.memory_space<vmem>>, vector<1x128xf32>
    %5 = vector.broadcast %4 : vector<1x128xf32> to vector<4x128xf32>
    %6 = arith.addf %3, %5 : vector<4x128xf32>
    %cst_5 = arith.constant 0.000000e+00 : f32
    %7 = vector.broadcast %cst_5 : f32 to vector<4x128xf32>
    %8 = arith.maximumf %6, %7 : vector<4x128xf32>
    %c0_6 = arith.constant 0 : index
    %c0_7 = arith.constant 0 : index
    %9 = vector.load %arg2[%c0_6, %c0_7] : memref<4x128xf32, #tpu.memory_space<vmem>>, vector<4x128xf32>
    %10 = arith.truncf %9 : vector<4x128xf32> to vector<4x128xbf16>
    %c0_8 = arith.constant 0 : index
    %c0_9 = arith.constant 0 : index
    %11 = vector.load %arg5[%c0_8, %c0_9] : memref<128x128xbf16, #tpu.memory_space<vmem>>, vector<128x128xbf16>
    %cst_10 = arith.constant dense<0.000000e+00> : vector<4x128xf32>
    %12 = tpu.matmul %10, %11, %cst_10 {dimension_numbers = #tpu.dot_dimension_numbers<[1], [0], [0], [1], [0, 0, 1, 1], [], []>} : vector<4x128xbf16>, vector<128x128xbf16>, vector<4x128xf32> -> vector<4x128xf32>
    %c0_11 = arith.constant 0 : index
    %c0_12 = arith.constant 0 : index
    %13 = vector.load %arg6[%c0_11, %c0_12] : memref<1x128xf32, #tpu.memory_space<vmem>>, vector<1x128xf32>
    %14 = vector.broadcast %13 : vector<1x128xf32> to vector<4x128xf32>
    %15 = arith.addf %12, %14 : vector<4x128xf32>
    %cst_13 = arith.constant 0.000000e+00 : f32
    %16 = vector.broadcast %cst_13 : f32 to vector<4x128xf32>
    %17 = arith.maximumf %15, %16 : vector<4x128xf32>
    %18 = arith.mulf %8, %17 : vector<4x128xf32>
    %cst_14 = arith.constant 0.000000e+00 : f32
    %19 = vector.broadcast %cst_14 : f32 to vector<4x128xf32>
    %20 = arith.maximumf %18, %19 : vector<4x128xf32>
    %21 = math.sqrt %20 : vector<4x128xf32>
    %cst_15 = arith.constant 0.000000e+00 : f32
    %22 = vector.broadcast %cst_15 : f32 to vector<4x128xf32>
    %23 = arith.subf %22, %18 : vector<4x128xf32>
    %cst_16 = arith.constant 0.000000e+00 : f32
    %24 = vector.broadcast %cst_16 : f32 to vector<4x128xf32>
    %25 = arith.maximumf %23, %24 : vector<4x128xf32>
    %26 = math.sqrt %25 : vector<4x128xf32>
    %27 = arith.subf %21, %26 : vector<4x128xf32>
    %28 = arith.mulf %27, %27 : vector<4x128xf32>
    %cst_17 = arith.constant dense<0.000000e+00> : vector<4xf32>
    %29 = vector.multi_reduction <add>, %28, %cst_17 [1] : vector<4x128xf32> to vector<4xf32>
    %30 = vector.shape_cast %29 : vector<4xf32> to vector<4x1xf32>
    %cst_18 = arith.constant 1.000000e-24 : f32
    %31 = vector.broadcast %cst_18 : f32 to vector<4x1xf32>
    %32 = arith.maximumf %30, %31 : vector<4x1xf32>
    %33 = math.rsqrt %32 : vector<4x1xf32>
    %34 = vector.broadcast %33 : vector<4x1xf32> to vector<4x128xf32>
    %35 = arith.mulf %27, %34 : vector<4x128xf32>
    %c0_19 = arith.constant 0 : index
    %c0_20 = arith.constant 0 : index
    %36 = vector.load %arg7[%c0_19, %c0_20] : memref<4x128xf32, #tpu.memory_space<vmem>>, vector<4x128xf32>
    tpu.vector_store %arg7[%c0_19, %c0_20], %35 {strides = array<i32>} : memref<4x128xf32, #tpu.memory_space<vmem>>, vector<4x128xf32>,
    return
  }
  func.func @transform_0(%arg0: i32) -> (i32, i32) {
    %c0_i32 = arith.constant 0 : i32
    %c0_i32_0 = arith.constant 0 : i32
    return %arg0, %c0_i32 : i32, i32
  }
  func.func @transform_1(%arg0: i32) -> (i32, i32) {
    %c0_i32 = arith.constant 0 : i32
    %c0_i32_0 = arith.constant 0 : i32
    return %arg0, %c0_i32 : i32, i32
  }
  func.func @transform_2(%arg0: i32) -> (i32, i32) {
    %c0_i32 = arith.constant 0 : i32
    %c0_i32_0 = arith.constant 0 : i32
    %c0_i32_1 = arith.constant 0 : i32
    return %c0_i32, %c0_i32_0 : i32, i32
  }
  func.func @transform_3(%arg0: i32) -> (i32, i32) {
    %c0_i32 = arith.constant 0 : i32
    %c0_i32_0 = arith.constant 0 : i32
    %c0_i32_1 = arith.constant 0 : i32
    return %c0_i32, %c0_i32_0 : i32, i32
  }
  func.func @transform_4(%arg0: i32) -> (i32, i32) {
    %c0_i32 = arith.constant 0 : i32
    %c0_i32_0 = arith.constant 0 : i32
    %c0_i32_1 = arith.constant 0 : i32
    return %c0_i32, %c0_i32_0 : i32, i32
  }
  func.func @transform_5(%arg0: i32) -> (i32, i32) {
    %c0_i32 = arith.constant 0 : i32
    %c0_i32_0 = arith.constant 0 : i32
    %c0_i32_1 = arith.constant 0 : i32
    return %c0_i32, %c0_i32_0 : i32, i32
  }
  func.func @transform_6(%arg0: i32) -> (i32, i32) {
    %c0_i32 = arith.constant 0 : i32
    %c0_i32_0 = arith.constant 0 : i32
    return %arg0, %c0_i32 : i32, i32
  }
}

module attributes {stable_mosaic.version = 11 : i64} {
  func.func @_lstm_head_kernel(%arg0: i32, %arg1: memref<4x128xf32, #tpu.memory_space<vmem>>, %arg2: memref<4x128xf32, #tpu.memory_space<vmem>>, %arg3: memref<128x512xbf16, #tpu.memory_space<vmem>>, %arg4: memref<128x512xbf16, #tpu.memory_space<vmem>>, %arg5: memref<1x512xf32, #tpu.memory_space<vmem>>, %arg6: memref<128x128xbf16, #tpu.memory_space<vmem>>, %arg7: memref<1x128xf32, #tpu.memory_space<vmem>>, %arg8: memref<128x256xbf16, #tpu.memory_space<vmem>>, %arg9: memref<1x256xf32, #tpu.memory_space<vmem>>, %arg10: memref<4x256xf32, #tpu.memory_space<vmem>>) attributes {dimension_semantics = [#tpu.dimension_semantics<parallel>], iteration_bounds = array<i64: 1>, scalar_prefetch = 0 : i64, scratch_operands = 0 : i64, tpu.core_type = #tpu.core_type<tc>, window_params = [{transform_indices = @transform_0, window_bounds = array<i64: 4, 128>}, {transform_indices = @transform_1, window_bounds = array<i64: 4, 128>}, {pipeline_mode = #tpu.pipeline_mode<synchronous>, transform_indices = @transform_2, window_bounds = array<i64: 128, 512>}, {pipeline_mode = #tpu.pipeline_mode<synchronous>, transform_indices = @transform_3, window_bounds = array<i64: 128, 512>}, {pipeline_mode = #tpu.pipeline_mode<synchronous>, transform_indices = @transform_4, window_bounds = array<i64: 1, 512>}, {pipeline_mode = #tpu.pipeline_mode<synchronous>, transform_indices = @transform_5, window_bounds = array<i64: 128, 128>}, {pipeline_mode = #tpu.pipeline_mode<synchronous>, transform_indices = @transform_6, window_bounds = array<i64: 1, 128>}, {pipeline_mode = #tpu.pipeline_mode<synchronous>, transform_indices = @transform_7, window_bounds = array<i64: 128, 256>}, {pipeline_mode = #tpu.pipeline_mode<synchronous>, transform_indices = @transform_8, window_bounds = array<i64: 1, 256>}, {transform_indices = @transform_9, window_bounds = array<i64: 4, 256>}]} {
    %c0 = arith.constant 0 : index
    %c0_0 = arith.constant 0 : index
    %0 = vector.load %arg3[%c0, %c0_0] : memref<128x512xbf16, #tpu.memory_space<vmem>>, vector<128x512xbf16>
    %c0_1 = arith.constant 0 : index
    %c0_2 = arith.constant 0 : index
    %1 = vector.load %arg4[%c0_1, %c0_2] : memref<128x512xbf16, #tpu.memory_space<vmem>>, vector<128x512xbf16>
    %c0_3 = arith.constant 0 : index
    %c0_4 = arith.constant 0 : index
    %2 = vector.load %arg5[%c0_3, %c0_4] : memref<1x512xf32, #tpu.memory_space<vmem>>, vector<1x512xf32>
    %c0_5 = arith.constant 0 : index
    %c0_6 = arith.constant 0 : index
    %3 = vector.load %arg1[%c0_5, %c0_6] : memref<4x128xf32, #tpu.memory_space<vmem>>, vector<4x128xf32>
    %4 = arith.truncf %3 : vector<4x128xf32> to vector<4x128xbf16>
    %cst = arith.constant dense<0.000000e+00> : vector<4x512xf32>
    %5 = tpu.matmul %4, %0, %cst {dimension_numbers = #tpu.dot_dimension_numbers<[1], [0], [0], [1], [0, 0, 1, 1], [], []>} : vector<4x128xbf16>, vector<128x512xbf16>, vector<4x512xf32> -> vector<4x512xf32>
    %6 = vector.broadcast %2 : vector<1x512xf32> to vector<4x512xf32>
    %7 = arith.addf %5, %6 : vector<4x512xf32>
    %8 = vector.extract_strided_slice %7 {offsets = [0, 0], sizes = [4, 128], strides = [1, 1]} : vector<4x512xf32> to vector<4x128xf32>
    %cst_7 = arith.constant 0.000000e+00 : f32
    %9 = vector.broadcast %cst_7 : f32 to vector<4x128xf32>
    %10 = arith.subf %9, %8 : vector<4x128xf32>
    %11 = math.exp %10 : vector<4x128xf32>
    %cst_8 = arith.constant 1.000000e+00 : f32
    %12 = vector.broadcast %cst_8 : f32 to vector<4x128xf32>
    %13 = arith.addf %12, %11 : vector<4x128xf32>
    %cst_9 = arith.constant 1.000000e+00 : f32
    %14 = vector.broadcast %cst_9 : f32 to vector<4x128xf32>
    %15 = arith.divf %14, %13 : vector<4x128xf32>
    %16 = vector.extract_strided_slice %7 {offsets = [0, 256], sizes = [4, 128], strides = [1, 1]} : vector<4x512xf32> to vector<4x128xf32>
    %17 = math.tanh %16 : vector<4x128xf32>
    %18 = vector.extract_strided_slice %7 {offsets = [0, 384], sizes = [4, 128], strides = [1, 1]} : vector<4x512xf32> to vector<4x128xf32>
    %cst_10 = arith.constant 0.000000e+00 : f32
    %19 = vector.broadcast %cst_10 : f32 to vector<4x128xf32>
    %20 = arith.subf %19, %18 : vector<4x128xf32>
    %21 = math.exp %20 : vector<4x128xf32>
    %cst_11 = arith.constant 1.000000e+00 : f32
    %22 = vector.broadcast %cst_11 : f32 to vector<4x128xf32>
    %23 = arith.addf %22, %21 : vector<4x128xf32>
    %cst_12 = arith.constant 1.000000e+00 : f32
    %24 = vector.broadcast %cst_12 : f32 to vector<4x128xf32>
    %25 = arith.divf %24, %23 : vector<4x128xf32>
    %26 = arith.mulf %15, %17 : vector<4x128xf32>
    %27 = math.tanh %26 : vector<4x128xf32>
    %28 = arith.mulf %25, %27 : vector<4x128xf32>
    %c0_13 = arith.constant 0 : index
    %c0_14 = arith.constant 0 : index
    %29 = vector.load %arg2[%c0_13, %c0_14] : memref<4x128xf32, #tpu.memory_space<vmem>>, vector<4x128xf32>
    %30 = arith.truncf %29 : vector<4x128xf32> to vector<4x128xbf16>
    %cst_15 = arith.constant dense<0.000000e+00> : vector<4x512xf32>
    %31 = tpu.matmul %30, %0, %cst_15 {dimension_numbers = #tpu.dot_dimension_numbers<[1], [0], [0], [1], [0, 0, 1, 1], [], []>} : vector<4x128xbf16>, vector<128x512xbf16>, vector<4x512xf32> -> vector<4x512xf32>
    %32 = vector.broadcast %2 : vector<1x512xf32> to vector<4x512xf32>
    %33 = arith.addf %31, %32 : vector<4x512xf32>
    %34 = arith.truncf %28 : vector<4x128xf32> to vector<4x128xbf16>
    %cst_16 = arith.constant dense<0.000000e+00> : vector<4x512xf32>
    %35 = tpu.matmul %34, %1, %cst_16 {dimension_numbers = #tpu.dot_dimension_numbers<[1], [0], [0], [1], [0, 0, 1, 1], [], []>} : vector<4x128xbf16>, vector<128x512xbf16>, vector<4x512xf32> -> vector<4x512xf32>
    %36 = arith.addf %33, %35 : vector<4x512xf32>
    %37 = vector.extract_strided_slice %36 {offsets = [0, 0], sizes = [4, 128], strides = [1, 1]} : vector<4x512xf32> to vector<4x128xf32>
    %cst_17 = arith.constant 0.000000e+00 : f32
    %38 = vector.broadcast %cst_17 : f32 to vector<4x128xf32>
    %39 = arith.subf %38, %37 : vector<4x128xf32>
    %40 = math.exp %39 : vector<4x128xf32>
    %cst_18 = arith.constant 1.000000e+00 : f32
    %41 = vector.broadcast %cst_18 : f32 to vector<4x128xf32>
    %42 = arith.addf %41, %40 : vector<4x128xf32>
    %cst_19 = arith.constant 1.000000e+00 : f32
    %43 = vector.broadcast %cst_19 : f32 to vector<4x128xf32>
    %44 = arith.divf %43, %42 : vector<4x128xf32>
    %45 = vector.extract_strided_slice %36 {offsets = [0, 128], sizes = [4, 128], strides = [1, 1]} : vector<4x512xf32> to vector<4x128xf32>
    %cst_20 = arith.constant 0.000000e+00 : f32
    %46 = vector.broadcast %cst_20 : f32 to vector<4x128xf32>
    %47 = arith.subf %46, %45 : vector<4x128xf32>
    %48 = math.exp %47 : vector<4x128xf32>
    %cst_21 = arith.constant 1.000000e+00 : f32
    %49 = vector.broadcast %cst_21 : f32 to vector<4x128xf32>
    %50 = arith.addf %49, %48 : vector<4x128xf32>
    %cst_22 = arith.constant 1.000000e+00 : f32
    %51 = vector.broadcast %cst_22 : f32 to vector<4x128xf32>
    %52 = arith.divf %51, %50 : vector<4x128xf32>
    %53 = vector.extract_strided_slice %36 {offsets = [0, 256], sizes = [4, 128], strides = [1, 1]} : vector<4x512xf32> to vector<4x128xf32>
    %54 = math.tanh %53 : vector<4x128xf32>
    %55 = vector.extract_strided_slice %36 {offsets = [0, 384], sizes = [4, 128], strides = [1, 1]} : vector<4x512xf32> to vector<4x128xf32>
    %cst_23 = arith.constant 0.000000e+00 : f32
    %56 = vector.broadcast %cst_23 : f32 to vector<4x128xf32>
    %57 = arith.subf %56, %55 : vector<4x128xf32>
    %58 = math.exp %57 : vector<4x128xf32>
    %cst_24 = arith.constant 1.000000e+00 : f32
    %59 = vector.broadcast %cst_24 : f32 to vector<4x128xf32>
    %60 = arith.addf %59, %58 : vector<4x128xf32>
    %cst_25 = arith.constant 1.000000e+00 : f32
    %61 = vector.broadcast %cst_25 : f32 to vector<4x128xf32>
    %62 = arith.divf %61, %60 : vector<4x128xf32>
    %63 = arith.mulf %52, %26 : vector<4x128xf32>
    %64 = arith.mulf %44, %54 : vector<4x128xf32>
    %65 = arith.addf %63, %64 : vector<4x128xf32>
    %66 = math.tanh %65 : vector<4x128xf32>
    %67 = arith.mulf %62, %66 : vector<4x128xf32>
    %68 = arith.truncf %67 : vector<4x128xf32> to vector<4x128xbf16>
    %c0_26 = arith.constant 0 : index
    %c0_27 = arith.constant 0 : index
    %69 = vector.load %arg6[%c0_26, %c0_27] : memref<128x128xbf16, #tpu.memory_space<vmem>>, vector<128x128xbf16>
    %cst_28 = arith.constant dense<0.000000e+00> : vector<4x128xf32>
    %70 = tpu.matmul %68, %69, %cst_28 {dimension_numbers = #tpu.dot_dimension_numbers<[1], [0], [0], [1], [0, 0, 1, 1], [], []>} : vector<4x128xbf16>, vector<128x128xbf16>, vector<4x128xf32> -> vector<4x128xf32>
    %c0_29 = arith.constant 0 : index
    %c0_30 = arith.constant 0 : index
    %71 = vector.load %arg7[%c0_29, %c0_30] : memref<1x128xf32, #tpu.memory_space<vmem>>, vector<1x128xf32>
    %72 = vector.broadcast %71 : vector<1x128xf32> to vector<4x128xf32>
    %73 = arith.addf %70, %72 : vector<4x128xf32>
    %74 = arith.truncf %73 : vector<4x128xf32> to vector<4x128xbf16>
    %c0_31 = arith.constant 0 : index
    %c0_32 = arith.constant 0 : index
    %75 = vector.load %arg8[%c0_31, %c0_32] : memref<128x256xbf16, #tpu.memory_space<vmem>>, vector<128x256xbf16>
    %cst_33 = arith.constant dense<0.000000e+00> : vector<4x256xf32>
    %76 = tpu.matmul %74, %75, %cst_33 {dimension_numbers = #tpu.dot_dimension_numbers<[1], [0], [0], [1], [0, 0, 1, 1], [], []>} : vector<4x128xbf16>, vector<128x256xbf16>, vector<4x256xf32> -> vector<4x256xf32>
    %c0_34 = arith.constant 0 : index
    %c0_35 = arith.constant 0 : index
    %77 = vector.load %arg9[%c0_34, %c0_35] : memref<1x256xf32, #tpu.memory_space<vmem>>, vector<1x256xf32>
    %78 = vector.broadcast %77 : vector<1x256xf32> to vector<4x256xf32>
    %79 = arith.addf %76, %78 : vector<4x256xf32>
    %c0_36 = arith.constant 0 : index
    %c0_37 = arith.constant 0 : index
    %80 = vector.load %arg10[%c0_36, %c0_37] : memref<4x256xf32, #tpu.memory_space<vmem>>, vector<4x256xf32>
    tpu.vector_store %arg10[%c0_36, %c0_37], %79 {strides = array<i32>} : memref<4x256xf32, #tpu.memory_space<vmem>>, vector<4x256xf32>,
    return
  }
  func.func @transform_0(%arg0: i32) -> (i32, i32) {
    %c0_i32 = arith.constant 0 : i32
    %c0_i32_0 = arith.constant 0 : i32
    return %arg0, %c0_i32 : i32, i32
  }
  func.func @transform_1(%arg0: i32) -> (i32, i32) {
    %c0_i32 = arith.constant 0 : i32
    %c0_i32_0 = arith.constant 0 : i32
    return %arg0, %c0_i32 : i32, i32
  }
  func.func @transform_2(%arg0: i32) -> (i32, i32) {
    %c0_i32 = arith.constant 0 : i32
    %c0_i32_0 = arith.constant 0 : i32
    %c0_i32_1 = arith.constant 0 : i32
    return %c0_i32, %c0_i32_0 : i32, i32
  }
  func.func @transform_3(%arg0: i32) -> (i32, i32) {
    %c0_i32 = arith.constant 0 : i32
    %c0_i32_0 = arith.constant 0 : i32
    %c0_i32_1 = arith.constant 0 : i32
    return %c0_i32, %c0_i32_0 : i32, i32
  }
  func.func @transform_4(%arg0: i32) -> (i32, i32) {
    %c0_i32 = arith.constant 0 : i32
    %c0_i32_0 = arith.constant 0 : i32
    %c0_i32_1 = arith.constant 0 : i32
    return %c0_i32, %c0_i32_0 : i32, i32
  }
  func.func @transform_5(%arg0: i32) -> (i32, i32) {
    %c0_i32 = arith.constant 0 : i32
    %c0_i32_0 = arith.constant 0 : i32
    %c0_i32_1 = arith.constant 0 : i32
    return %c0_i32, %c0_i32_0 : i32, i32
  }
  func.func @transform_6(%arg0: i32) -> (i32, i32) {
    %c0_i32 = arith.constant 0 : i32
    %c0_i32_0 = arith.constant 0 : i32
    %c0_i32_1 = arith.constant 0 : i32
    return %c0_i32, %c0_i32_0 : i32, i32
  }
  func.func @transform_7(%arg0: i32) -> (i32, i32) {
    %c0_i32 = arith.constant 0 : i32
    %c0_i32_0 = arith.constant 0 : i32
    %c0_i32_1 = arith.constant 0 : i32
    return %c0_i32, %c0_i32_0 : i32, i32
  }
  func.func @transform_8(%arg0: i32) -> (i32, i32) {
    %c0_i32 = arith.constant 0 : i32
    %c0_i32_0 = arith.constant 0 : i32
    %c0_i32_1 = arith.constant 0 : i32
    return %c0_i32, %c0_i32_0 : i32, i32
  }
  func.func @transform_9(%arg0: i32) -> (i32, i32) {
    %c0_i32 = arith.constant 0 : i32
    %c0_i32_0 = arith.constant 0 : i32
    return %arg0, %c0_i32 : i32, i32
  }
}

</mosaic_0001>

<bundles_post_ra>
// kernel: top_down_baseline_forward.9
= control target key start
LH: loop header
LB: loop body
LE: loop exit
PB: predicated region body
PF: predicated region fallthrough
CT: control target
= control target key end

     0   :  { %vm19_vm0 = vcmask 519168   ;;  %v196_v0 = vmov 0.0   ;;  %vm197_vm1 = vmmov 0   ;;  %s254_s1 = inlined_call_operand.vmem [shape: bf16[128,64], index: 1, kind: input, shape index: {}]   ;;  %s255_s0 = inlined_call_operand.vmem [shape: f32[4,128], index: 0, kind: input, shape index: {}]   ;;  %s256_s2 = inlined_call_operand.vmem [shape: f32[1,64], index: 2, kind: input, shape index: {}]   ;;  %s257_s3 = inlined_call_operand.vmem [shape: f32[4,64], index: 3, kind: output, shape index: {}]  }
   0x1   :  { %166 = vmatprep.subr.bf16.mxu0 %v196_v0  ;;  %v188_v1 = vld [vmem:[%s254_s1] sm:$0xff]   ;;  %182 = vmatprep.mubr.msk.bf16.mxu0 %vm197_vm1, %v196_v0  ;;  %20 = vst.msk [vmem:[#allocation2] sm:$0xf] %vm19_vm0, %v196_v0  ;;  %v189_v2 = vld [vmem:[%s254_s1 + $0x8] sm:$0xff]   ;;  %v190_v3 = vld [vmem:[%s254_s1 + $0x10] sm:$0xff]  }
   0x2   :  { %167 = vmatpush3.bf16.msra.mxu0 %v188_v1  ;;  %v191_v4 = vld [vmem:[%s254_s1 + $0x18] sm:$0xff]   ;;  %v192_v5 = vld [vmem:[%s254_s1 + $0x20] sm:$0xff]   ;;  %v193_v6 = vld [vmem:[%s254_s1 + $0x28] sm:$0xff]  }
   0x3   :  { %168 = vmatprep.subr.bf16.mxu0 %v196_v0  ;;  %v194_v7 = vld [vmem:[%s254_s1 + $0x30] sm:$0xff]   ;;  %v195_v8 = vld [vmem:[%s254_s1 + $0x38] sm:$0xff]   ;;  %v22_v9 = vld [vmem:[%s255_s0] sm:$0xf] }
   0x4   :  { %v23_v10 = vpack.c.bf16 %v22_v9, %v22_v9  ;;  %v156_v17 = vld [vmem:[%s256_s2] ss:$0 sm:$0xff] }
   0x6   :  { %169 = vmatpush3.bf16.msra.mxu0 %v189_v2 }
   0x7   :  { %170 = vmatprep.subr.bf16.mxu0 %v196_v0 }
   0x8   :  { %v21_v11 = vld [vmem:[#allocation2] sm:$0xf] }
   0xa   :  { %171 = vmatpush3.bf16.msra.mxu0 %v190_v3 }
   0xb   :  { %172 = vmatprep.subr.bf16.mxu0 %v196_v0 }
   0xe   :  { %173 = vmatpush3.bf16.msra.mxu0 %v191_v4 }
   0xf   :  { %174 = vmatprep.subr.bf16.mxu0 %v196_v0 }
  0x12   :  { %175 = vmatpush3.bf16.msra.mxu0 %v192_v5 }
  0x13   :  { %176 = vmatprep.subr.bf16.mxu0 %v196_v0 }
  0x16   :  { %177 = vmatpush3.bf16.msra.mxu0 %v193_v6 }
  0x17   :  { %178 = vmatprep.subr.bf16.mxu0 %v196_v0 }
  0x1a   :  { %179 = vmatpush3.bf16.msra.mxu0 %v194_v7 }
  0x1b   :  { %180 = vmatprep.subr.bf16.mxu0 %v196_v0 }
  0x1e   :  { %181 = vmatpush3.bf16.msra.mxu0 %v195_v8 }
  0x21   :  { %183 = vmatmul.mubr.bf16.vlgmr.msra.gmra.mrb[0].mxu0 %v23_v10 }
  0xf4   :  { %v122_v12 = vpop.f32.mrb[0].mxu0 }
  0xf5   :  { %v128_v13 = vadd.f32 %v122_v12, %v21_v11  ;;  %v184_v14 = vpop.f32.mrb[1].mxu0 }
  0xf6   :  { %v125_v15 = vpop.f32.mrb[2].mxu0 }
  0xf7   :  { %130 = vst.msk [vmem:[#allocation2] sm:$0xf] %vm19_vm0, %v128_v13  ;;  %v185_v16 = vpop.f32.mrb[3].mxu0 }
  0xfe   :  { %v134_v18 = vld [vmem:[#allocation2] sm:$0xf] }
  0xff   :  { %v142_v19 = vadd.f32 %v156_v17, %v134_v18 }
 0x101   :  { %143 = vst.msk [vmem:[%s257_s3] sm:$0xf] %vm19_vm0, %v142_v19 }

// kernel: top_down_baseline_forward.10
= control target key start
LH: loop header
LB: loop body
LE: loop exit
PB: predicated region body
PF: predicated region fallthrough
CT: control target
= control target key end

     0   :  { %v195_v0 = vmov 0.0   ;;  %vm196_vm0 = vmmov 0   ;;  %s250_s1 = inlined_call_operand.vmem [shape: bf16[128,128], index: 1, kind: input, shape index: {}]   ;;  %s251_s0 = inlined_call_operand.vmem [shape: f32[4,128], index: 0, kind: input, shape index: {}]   ;;  %s252_s2 = inlined_call_operand.vmem [shape: f32[1,128], index: 2, kind: input, shape index: {}]   ;;  %s253_s3 = inlined_call_operand.vmem [shape: f32[4,128], index: 3, kind: output, shape index: {}]  }
   0x1   :  { %165 = vmatprep.subr.bf16.mxu0 %v195_v0  ;;  %19 = vst [vmem:[#allocation2] sm:$0xf] %v195_v0  ;;  %v187_v1 = vld [vmem:[%s250_s1] sm:$0xff]   ;;  %181 = vmatprep.mubr.msk.bf16.mxu0 %vm196_vm0, %v195_v0  ;;  %v188_v2 = vld [vmem:[%s250_s1 + $0x8] sm:$0xff]   ;;  %v189_v3 = vld [vmem:[%s250_s1 + $0x10] sm:$0xff]  }
   0x2   :  { %166 = vmatpush3.bf16.msra.mxu0 %v187_v1  ;;  %v190_v4 = vld [vmem:[%s250_s1 + $0x18] sm:$0xff]   ;;  %v191_v5 = vld [vmem:[%s250_s1 + $0x20] sm:$0xff]   ;;  %v192_v6 = vld [vmem:[%s250_s1 + $0x28] sm:$0xff]  }
   0x3   :  { %167 = vmatprep.subr.bf16.mxu0 %v195_v0  ;;  %v193_v7 = vld [vmem:[%s250_s1 + $0x30] sm:$0xff]   ;;  %v194_v8 = vld [vmem:[%s250_s1 + $0x38] sm:$0xff]   ;;  %v21_v9 = vld [vmem:[%s251_s0] sm:$0xf] }
   0x4   :  { %v22_v10 = vpack.c.bf16 %v21_v9, %v21_v9  ;;  %v155_v17 = vld [vmem:[%s252_s2] ss:$0 sm:$0xff] }
   0x6   :  { %168 = vmatpush3.bf16.msra.mxu0 %v188_v2 }
   0x7   :  { %169 = vmatprep.subr.bf16.mxu0 %v195_v0 }
   0x8   :  { %v20_v11 = vld [vmem:[#allocation2] sm:$0xf] }
   0xa   :  { %170 = vmatpush3.bf16.msra.mxu0 %v189_v3 }
   0xb   :  { %171 = vmatprep.subr.bf16.mxu0 %v195_v0 }
   0xe   :  { %172 = vmatpush3.bf16.msra.mxu0 %v190_v4 }
   0xf   :  { %173 = vmatprep.subr.bf16.mxu0 %v195_v0 }
  0x12   :  { %174 = vmatpush3.bf16.msra.mxu0 %v191_v5 }
  0x13   :  { %175 = vmatprep.subr.bf16.mxu0 %v195_v0 }
  0x16   :  { %176 = vmatpush3.bf16.msra.mxu0 %v192_v6 }
  0x17   :  { %177 = vmatprep.subr.bf16.mxu0 %v195_v0 }
  0x1a   :  { %178 = vmatpush3.bf16.msra.mxu0 %v193_v7 }
  0x1b   :  { %179 = vmatprep.subr.bf16.mxu0 %v195_v0 }
  0x1e   :  { %180 = vmatpush3.bf16.msra.mxu0 %v194_v8 }
  0x21   :  { %182 = vmatmul.mubr.bf16.vlgmr.msra.gmra.mrb[0].mxu0 %v22_v10 }
  0xf4   :  { %v121_v12 = vpop.f32.mrb[0].mxu0 }
  0xf5   :  { %v127_v13 = vadd.f32 %v121_v12, %v20_v11  ;;  %v183_v14 = vpop.f32.mrb[1].mxu0 }
  0xf6   :  { %v124_v15 = vpop.f32.mrb[2].mxu0 }
  0xf7   :  { %128 = vst [vmem:[#allocation2] sm:$0xf] %v127_v13  ;;  %v184_v16 = vpop.f32.mrb[3].mxu0 }
  0xfe   :  { %v132_v18 = vld [vmem:[#allocation2] sm:$0xf] }
  0xff   :  { %v140_v19 = vadd.f32 %v155_v17, %v132_v18 }
 0x101   :  { %v141_v20 = vmax.f32 %v140_v19, 0.0 }
 0x103   :  { %142 = vst [vmem:[%s253_s3] sm:$0xf] %v141_v20 }

// kernel: top_down_baseline_forward.12
= control target key start
LH: loop header
LB: loop body
LE: loop exit
PB: predicated region body
PF: predicated region fallthrough
CT: control target
= control target key end

     0   :  { %v207_v0 = vmov 0.0   ;;  %vm208_vm0 = vmmov 0   ;;  %s270_s1 = inlined_call_operand.vmem [shape: bf16[128,128], index: 1, kind: input, shape index: {}]   ;;  %s271_s0 = inlined_call_operand.vmem [shape: f32[4,128], index: 0, kind: input, shape index: {}]   ;;  %s272_s2 = inlined_call_operand.vmem [shape: f32[1,128], index: 2, kind: input, shape index: {}]   ;;  %s273_s3 = inlined_call_operand.vmem [shape: f32[1,128], index: 3, kind: input, shape index: {}]   ;;  %s274_s4 = inlined_call_operand.vmem [shape: f32[4,128], index: 4, kind: output, shape index: {}]  }
   0x1   :  { %177 = vmatprep.subr.bf16.mxu0 %v207_v0  ;;  %22 = vst [vmem:[#allocation2] sm:$0xf] %v207_v0  ;;  %v199_v1 = vld [vmem:[%s270_s1] sm:$0xff]   ;;  %193 = vmatprep.mubr.msk.bf16.mxu0 %vm208_vm0, %v207_v0  ;;  %v200_v2 = vld [vmem:[%s270_s1 + $0x8] sm:$0xff]   ;;  %v201_v3 = vld [vmem:[%s270_s1 + $0x10] sm:$0xff]  }
   0x2   :  { %178 = vmatpush3.bf16.msra.mxu0 %v199_v1  ;;  %v202_v4 = vld [vmem:[%s270_s1 + $0x18] sm:$0xff]   ;;  %v203_v5 = vld [vmem:[%s270_s1 + $0x20] sm:$0xff]   ;;  %v204_v6 = vld [vmem:[%s270_s1 + $0x28] sm:$0xff]  }
   0x3   :  { %179 = vmatprep.subr.bf16.mxu0 %v207_v0  ;;  %v205_v7 = vld [vmem:[%s270_s1 + $0x30] sm:$0xff]   ;;  %v206_v8 = vld [vmem:[%s270_s1 + $0x38] sm:$0xff]   ;;  %v24_v9 = vld [vmem:[%s271_s0] sm:$0xf] }
   0x4   :  { %v25_v10 = vpack.c.bf16 %v24_v9, %v24_v9  ;;  %v166_v17 = vld [vmem:[%s272_s2] ss:$0 sm:$0xff] }
   0x5   :  { %v167_v20 = vld [vmem:[%s273_s3] ss:$0 sm:$0xff] }
   0x6   :  { %180 = vmatpush3.bf16.msra.mxu0 %v200_v2 }
   0x7   :  { %181 = vmatprep.subr.bf16.mxu0 %v207_v0 }
   0x8   :  { %v23_v11 = vld [vmem:[#allocation2] sm:$0xf] }
   0xa   :  { %182 = vmatpush3.bf16.msra.mxu0 %v201_v3 }
   0xb   :  { %183 = vmatprep.subr.bf16.mxu0 %v207_v0 }
   0xe   :  { %184 = vmatpush3.bf16.msra.mxu0 %v202_v4 }
   0xf   :  { %185 = vmatprep.subr.bf16.mxu0 %v207_v0 }
  0x12   :  { %186 = vmatpush3.bf16.msra.mxu0 %v203_v5 }
  0x13   :  { %187 = vmatprep.subr.bf16.mxu0 %v207_v0 }
  0x16   :  { %188 = vmatpush3.bf16.msra.mxu0 %v204_v6 }
  0x17   :  { %189 = vmatprep.subr.bf16.mxu0 %v207_v0 }
  0x1a   :  { %190 = vmatpush3.bf16.msra.mxu0 %v205_v7 }
  0x1b   :  { %191 = vmatprep.subr.bf16.mxu0 %v207_v0 }
  0x1e   :  { %192 = vmatpush3.bf16.msra.mxu0 %v206_v8 }
  0x21   :  { %194 = vmatmul.mubr.bf16.vlgmr.msra.gmra.mrb[0].mxu0 %v25_v10 }
  0xf4   :  { %v124_v12 = vpop.f32.mrb[0].mxu0 }
  0xf5   :  { %v130_v13 = vadd.f32 %v124_v12, %v23_v11  ;;  %v195_v14 = vpop.f32.mrb[1].mxu0 }
  0xf6   :  { %v127_v15 = vpop.f32.mrb[2].mxu0 }
  0xf7   :  { %131 = vst [vmem:[#allocation2] sm:$0xf] %v130_v13  ;;  %v196_v16 = vpop.f32.mrb[3].mxu0 }
  0xfe   :  { %v135_v18 = vld [vmem:[#allocation2] sm:$0xf] }
  0xff   :  { %v143_v19 = vadd.f32 %v166_v17, %v135_v18 }
 0x101   :  { %v144_v21 = vmax.f32 %v143_v19, 0.0 }
 0x103   :  { %v152_v22 = vmul.f32 %v167_v20, %v144_v21 }
 0x105   :  { %153 = vst [vmem:[%s274_s4] sm:$0xf] %v152_v22 }

// kernel: top_down_baseline_forward.11
= control target key start
LH: loop header
LB: loop body
LE: loop exit
PB: predicated region body
PF: predicated region fallthrough
CT: control target
= control target key end

     0   :  { %vm181_vm0 = vcmask 1043456   ;;  %vm132_vm1 = vcmask 64512   ;;  %s1131_s1 = inlined_call_operand.vmem [shape: bf16[8,128], index: 1, kind: input, shape index: {}]   ;;  %s1132_s0 = inlined_call_operand.vmem [shape: f32[256,8], index: 0, kind: input, shape index: {}]   ;;  %s1133_s2 = inlined_call_operand.vmem [shape: f32[1,128], index: 2, kind: input, shape index: {}]   ;;  %s1134_s3 = inlined_call_operand.vmem [shape: bf16[256,128], index: 3, kind: output, shape index: {}]  }
   0x1   :  { %v131_v0 = vld [vmem:[%s1131_s1] sm:$0xf]  ;;  %v84_v2 = vld [vmem:[%s1132_s0 + $0x8] sm:$0xff]  ;;  %v85_v7 = vld [vmem:[%s1132_s0 + $0x10] sm:$0xff] }
   0x2   :  { %v83_v1 = vld [vmem:[%s1132_s0] sm:$0xff]  ;;  %909 = vmatprep.subr.msk.bf16.mxu0 %vm181_vm0, %v131_v0  ;;  %910 = vmatprep.subr.msk.bf16.mxu1 %vm181_vm0, %v131_v0  ;;  %v183_v3 = vsel %vm181_vm0, %v131_v0, 0  ;;  %v100_v6 = vld [vmem:[%s1132_s0 + $0x88] sm:$0xff]  ;;  %v86_v9 = vld [vmem:[%s1132_s0 + $0x18] sm:$0xff] }
   0x3   :  { %v115_v4 = vpack.c.bf16 %v84_v2, %v83_v1  ;;  %v99_v5 = vld [vmem:[%s1132_s0 + $0x80] sm:$0xff]  ;;  %874 = vmatpush3.bf16.msra.mxu0 %v183_v3  ;;  %908 = vmatpush3.bf16.msra.mxu1 %v183_v3  ;;  %v101_v10 = vld [vmem:[%s1132_s0 + $0x90] sm:$0xff]  ;;  %v102_v11 = vld [vmem:[%s1132_s0 + $0x98] sm:$0xff]  ;;  %v116_v12 = vpack.c.bf16 %v86_v9, %v85_v7 }
   0x4   :  { %v123_v8 = vpack.c.bf16 %v100_v6, %v99_v5  ;;  %v124_v13 = vpack.c.bf16 %v102_v11, %v101_v10  ;;  %v87_v14 = vld [vmem:[%s1132_s0 + $0x20] sm:$0xff]  ;;  %v88_v15 = vld [vmem:[%s1132_s0 + $0x28] sm:$0xff]  ;;  %v89_v20 = vld [vmem:[%s1132_s0 + $0x30] sm:$0xff] }
   0x5   :  { %875 = vmatprep.mubr.msk.bf16.mxu0 %vm132_vm1, %v115_v4  ;;  %v103_v16 = vld [vmem:[%s1132_s0 + $0xa0] sm:$0xff]  ;;  %v117_v17 = vpack.c.bf16 %v88_v15, %v87_v14  ;;  %v104_v18 = vld [vmem:[%s1132_s0 + $0xa8] sm:$0xff]  ;;  %v90_v21 = vld [vmem:[%s1132_s0 + $0x38] sm:$0xff] }
   0x6   :  { %891 = vmatprep.mubr.msk.bf16.mxu1 %vm132_vm1, %v123_v8  ;;  %876 = vmatmul.mubr.msk.bf16.vlgmr.msra.gmra.mrb[0].mxu0 %vm132_vm1, %v116_v12  ;;  %v125_v19 = vpack.c.bf16 %v104_v18, %v103_v16  ;;  %v105_v22 = vld [vmem:[%s1132_s0 + $0xb0] sm:$0xff]  ;;  %v106_v23 = vld [vmem:[%s1132_s0 + $0xb8] sm:$0xff]  ;;  %v91_v24 = vld [vmem:[%s1132_s0 + $0x40] sm:$0xff]  ;;  %v118_v28 = vpack.c.bf16 %v90_v21, %v89_v20 }
   0x7   :  { %892 = vmatmul.mubr.msk.bf16.vlgmr.msra.gmra.mrb[0].mxu1 %vm132_vm1, %v124_v13  ;;  %879 = vmatprep.mubr.msk.bf16.mxu0 %vm132_vm1, %v117_v17  ;;  %v92_v25 = vld [vmem:[%s1132_s0 + $0x48] sm:$0xff]  ;;  %v107_v26 = vld [vmem:[%s1132_s0 + $0xc0] sm:$0xff]  ;;  %v126_v29 = vpack.c.bf16 %v106_v23, %v105_v22  ;;  %v93_v32 = vld [vmem:[%s1132_s0 + $0x50] sm:$0xff] }
   0x8   :  { %895 = vmatprep.mubr.msk.bf16.mxu1 %vm132_vm1, %v125_v19  ;;  %v108_v27 = vld [vmem:[%s1132_s0 + $0xc8] sm:$0xff]  ;;  %v119_v30 = vpack.c.bf16 %v92_v25, %v91_v24  ;;  %v94_v33 = vld [vmem:[%s1132_s0 + $0x58] sm:$0xff]  ;;  %v109_v34 = vld [vmem:[%s1132_s0 + $0xd0] sm:$0xff] }
   0x9   :  { %v127_v31 = vpack.c.bf16 %v108_v27, %v107_v26  ;;  %v110_v35 = vld [vmem:[%s1132_s0 + $0xd8] sm:$0xff]  ;;  %v95_v36 = vld [vmem:[%s1132_s0 + $0x60] sm:$0xff]  ;;  %v96_v37 = vld [vmem:[%s1132_s0 + $0x68] sm:$0xff]  ;;  %v120_v40 = vpack.c.bf16 %v94_v33, %v93_v32 }
   0xa   :  { %v111_v38 = vld [vmem:[%s1132_s0 + $0xe0] sm:$0xff]  ;;  %v112_v39 = vld [vmem:[%s1132_s0 + $0xe8] sm:$0xff]  ;;  %v128_v41 = vpack.c.bf16 %v110_v35, %v109_v34  ;;  %v121_v42 = vpack.c.bf16 %v96_v37, %v95_v36  ;;  %v97_v44 = vld [vmem:[%s1132_s0 + $0x70] sm:$0xff] }
   0xb   :  { %v129_v43 = vpack.c.bf16 %v112_v39, %v111_v38  ;;  %v98_v45 = vld [vmem:[%s1132_s0 + $0x78] sm:$0xff]  ;;  %v113_v46 = vld [vmem:[%s1132_s0 + $0xf0] sm:$0xff]  ;;  %v1049_v50 = vld [vmem:[%s1133_s2] ss:$0 sm:$0xff] }
   0xc   :  { %v114_v47 = vld [vmem:[%s1132_s0 + $0xf8] sm:$0xff]  ;;  %v122_v48 = vpack.c.bf16 %v98_v45, %v97_v44 }
   0xd   :  { %v130_v49 = vpack.c.bf16 %v114_v47, %v113_v46 }
   0xe   :  { %880 = vmatmul.mubr.msk.bf16.gmra.mrb[4].mxu0 %vm132_vm1, %v118_v28 }
   0xf   :  { %896 = vmatmul.mubr.msk.bf16.gmra.mrb[4].mxu1 %vm132_vm1, %v126_v29  ;;  %883 = vmatprep.mubr.msk.bf16.mxu0 %vm132_vm1, %v119_v30 }
  0x10   :  { %899 = vmatprep.mubr.msk.bf16.mxu1 %vm132_vm1, %v127_v31 }
  0x16   :  { %884 = vmatmul.mubr.msk.bf16.gmra.mrb[8].mxu0 %vm132_vm1, %v120_v40 }
  0x17   :  { %900 = vmatmul.mubr.msk.bf16.gmra.mrb[8].mxu1 %vm132_vm1, %v128_v41  ;;  %887 = vmatprep.mubr.msk.bf16.mxu0 %vm132_vm1, %v121_v42 }
  0x18   :  { %903 = vmatprep.mubr.msk.bf16.mxu1 %vm132_vm1, %v129_v43 }
  0x1e   :  { %888 = vmatmul.mubr.msk.bf16.gmra.mrb[12].mxu0 %vm132_vm1, %v122_v48 }
  0x1f   :  { %904 = vmatmul.mubr.msk.bf16.gmra.mrb[12].mxu1 %vm132_vm1, %v130_v49 }
  0xd9   :  { %v877_v51 = vpop.f32.mrb[0].mxu0 }
  0xda   :  { %v893_v52 = vpop.f32.mrb[0].mxu1  ;;  %v454_v53 = vadd.f32 %v877_v51, %v1049_v50  ;;  %v219_v55 = vpop.f32.mrb[1].mxu0 }
  0xdb   :  { %v470_v54 = vadd.f32 %v893_v52, %v1049_v50  ;;  %v283_v56 = vpop.f32.mrb[1].mxu1  ;;  %v452_v57 = vadd.f32 %v1049_v50, %v219_v55  ;;  %v878_v59 = vpop.f32.mrb[2].mxu0 }
  0xdc   :  { %v468_v58 = vadd.f32 %v1049_v50, %v283_v56  ;;  %v894_v60 = vpop.f32.mrb[2].mxu1  ;;  %v455_v61 = vadd.f32 %v878_v59, %v1049_v50  ;;  %v222_v63 = vpop.f32.mrb[3].mxu0  ;;  %v486_v3 = vmax.f32 %v454_v53, 0.0 }
  0xdd   :  { %v471_v62 = vadd.f32 %v894_v60, %v1049_v50  ;;  %v286_v0 = vpop.f32.mrb[3].mxu1  ;;  %v453_v1 = vadd.f32 %v1049_v50, %v222_v63  ;;  %v502_v4 = vmax.f32 %v470_v54, 0.0  ;;  %v484_v7 = vmax.f32 %v452_v57, 0.0 }
  0xde   :  { %v469_v2 = vadd.f32 %v1049_v50, %v286_v0  ;;  %v487_v5 = vmax.f32 %v455_v61, 0.0  ;;  %v500_v8 = vmax.f32 %v468_v58, 0.0 }
  0xdf   :  { %v503_v6 = vmax.f32 %v471_v62, 0.0  ;;  %v485_v9 = vmax.f32 %v453_v1, 0.0 }
  0xe0   :  { %v501_v10 = vmax.f32 %v469_v2, 0.0  ;;  %v769_v11 = vpack.c.bf16 %v487_v5, %v486_v3 }
  0xe1   :  { %v809_v12 = vpack.c.bf16 %v503_v6, %v502_v4  ;;  %v764_v13 = vpack.c.bf16 %v485_v9, %v484_v7  ;;  %v881_v15 = vpop.f32.mrb[4].mxu0 }
  0xe2   :  { %v804_v14 = vpack.c.bf16 %v501_v10, %v500_v8  ;;  %v897_v16 = vpop.f32.mrb[4].mxu1  ;;  %841 = vst [vmem:[%s1134_s3 + $0x8] sm:$0xff] %v769_v11   ;;  %v458_v17 = vadd.f32 %v881_v15, %v1049_v50  ;;  %v235_v19 = vpop.f32.mrb[5].mxu0 }
  0xe3   :  { %849 = vst [vmem:[%s1134_s3 + $0x48] sm:$0xff] %v809_v12   ;;  %v474_v18 = vadd.f32 %v897_v16, %v1049_v50  ;;  %v299_v20 = vpop.f32.mrb[5].mxu1  ;;  %765 = vst [vmem:[%s1134_s3] sm:$0xff] %v764_v13   ;;  %v456_v21 = vadd.f32 %v1049_v50, %v235_v19  ;;  %v882_v23 = vpop.f32.mrb[6].mxu0 }
  0xe4   :  { %848 = vst [vmem:[%s1134_s3 + $0x40] sm:$0xff] %v804_v14   ;;  %v472_v22 = vadd.f32 %v1049_v50, %v299_v20  ;;  %v898_v24 = vpop.f32.mrb[6].mxu1  ;;  %v459_v25 = vadd.f32 %v882_v23, %v1049_v50  ;;  %v238_v27 = vpop.f32.mrb[7].mxu0  ;;  %v490_v31 = vmax.f32 %v458_v17, 0.0 }
  0xe5   :  { %v475_v26 = vadd.f32 %v898_v24, %v1049_v50  ;;  %v302_v28 = vpop.f32.mrb[7].mxu1  ;;  %v457_v29 = vadd.f32 %v1049_v50, %v238_v27  ;;  %v506_v32 = vmax.f32 %v474_v18, 0.0  ;;  %v488_v35 = vmax.f32 %v456_v21, 0.0 }
  0xe6   :  { %v473_v30 = vadd.f32 %v1049_v50, %v302_v28  ;;  %v491_v33 = vmax.f32 %v459_v25, 0.0  ;;  %v504_v36 = vmax.f32 %v472_v22, 0.0 }
  0xe7   :  { %v507_v34 = vmax.f32 %v475_v26, 0.0  ;;  %v489_v37 = vmax.f32 %v457_v29, 0.0 }
  0xe8   :  { %v505_v38 = vmax.f32 %v473_v30, 0.0  ;;  %v779_v39 = vpack.c.bf16 %v491_v33, %v490_v31 }
  0xe9   :  { %v819_v40 = vpack.c.bf16 %v507_v34, %v506_v32  ;;  %v774_v41 = vpack.c.bf16 %v489_v37, %v488_v35  ;;  %v885_v43 = vpop.f32.mrb[8].mxu0 }
  0xea   :  { %v814_v42 = vpack.c.bf16 %v505_v38, %v504_v36  ;;  %v901_v44 = vpop.f32.mrb[8].mxu1  ;;  %843 = vst [vmem:[%s1134_s3 + $0x18] sm:$0xff] %v779_v39   ;;  %v462_v45 = vadd.f32 %v885_v43, %v1049_v50  ;;  %v251_v47 = vpop.f32.mrb[9].mxu0 }
  0xeb   :  { %851 = vst [vmem:[%s1134_s3 + $0x58] sm:$0xff] %v819_v40   ;;  %v478_v46 = vadd.f32 %v901_v44, %v1049_v50  ;;  %v315_v48 = vpop.f32.mrb[9].mxu1  ;;  %842 = vst [vmem:[%s1134_s3 + $0x10] sm:$0xff] %v774_v41   ;;  %v460_v49 = vadd.f32 %v1049_v50, %v251_v47  ;;  %v886_v52 = vpop.f32.mrb[10].mxu0 }
  0xec   :  { %850 = vst [vmem:[%s1134_s3 + $0x50] sm:$0xff] %v814_v42   ;;  %v476_v51 = vadd.f32 %v1049_v50, %v315_v48  ;;  %v902_v53 = vpop.f32.mrb[10].mxu1  ;;  %v463_v54 = vadd.f32 %v886_v52, %v1049_v50  ;;  %v254_v56 = vpop.f32.mrb[11].mxu0  ;;  %v494_v60 = vmax.f32 %v462_v45, 0.0 }
  0xed   :  { %v479_v55 = vadd.f32 %v902_v53, %v1049_v50  ;;  %v318_v57 = vpop.f32.mrb[11].mxu1  ;;  %v461_v58 = vadd.f32 %v1049_v50, %v254_v56  ;;  %v510_v61 = vmax.f32 %v478_v46, 0.0  ;;  %v492_v0 = vmax.f32 %v460_v49, 0.0 }
  0xee   :  { %v477_v59 = vadd.f32 %v1049_v50, %v318_v57  ;;  %v495_v62 = vmax.f32 %v463_v54, 0.0  ;;  %v508_v1 = vmax.f32 %v476_v51, 0.0 }
  0xef   :  { %v511_v63 = vmax.f32 %v479_v55, 0.0  ;;  %v493_v2 = vmax.f32 %v461_v58, 0.0 }
  0xf0   :  { %v509_v3 = vmax.f32 %v477_v59, 0.0  ;;  %v789_v4 = vpack.c.bf16 %v495_v62, %v494_v60 }
  0xf1   :  { %v829_v5 = vpack.c.bf16 %v511_v63, %v510_v61  ;;  %v784_v6 = vpack.c.bf16 %v493_v2, %v492_v0  ;;  %v889_v8 = vpop.f32.mrb[12].mxu0 }
  0xf2   :  { %v824_v7 = vpack.c.bf16 %v509_v3, %v508_v1  ;;  %v905_v9 = vpop.f32.mrb[12].mxu1  ;;  %845 = vst [vmem:[%s1134_s3 + $0x28] sm:$0xff] %v789_v4   ;;  %v466_v10 = vadd.f32 %v889_v8, %v1049_v50  ;;  %v267_v12 = vpop.f32.mrb[13].mxu0 }
  0xf3   :  { %853 = vst [vmem:[%s1134_s3 + $0x68] sm:$0xff] %v829_v5   ;;  %v482_v11 = vadd.f32 %v905_v9, %v1049_v50  ;;  %v331_v13 = vpop.f32.mrb[13].mxu1  ;;  %844 = vst [vmem:[%s1134_s3 + $0x20] sm:$0xff] %v784_v6   ;;  %v464_v14 = vadd.f32 %v1049_v50, %v267_v12  ;;  %v890_v16 = vpop.f32.mrb[14].mxu0 }
  0xf4   :  { %852 = vst [vmem:[%s1134_s3 + $0x60] sm:$0xff] %v824_v7   ;;  %v480_v15 = vadd.f32 %v1049_v50, %v331_v13  ;;  %v906_v17 = vpop.f32.mrb[14].mxu1  ;;  %v467_v18 = vadd.f32 %v890_v16, %v1049_v50  ;;  %v270_v20 = vpop.f32.mrb[15].mxu0  ;;  %v498_v24 = vmax.f32 %v466_v10, 0.0 }
  0xf5   :  { %v483_v19 = vadd.f32 %v906_v17, %v1049_v50  ;;  %v334_v21 = vpop.f32.mrb[15].mxu1  ;;  %v465_v22 = vadd.f32 %v1049_v50, %v270_v20  ;;  %v514_v25 = vmax.f32 %v482_v11, 0.0  ;;  %v496_v28 = vmax.f32 %v464_v14, 0.0 }
  0xf6   :  { %v481_v23 = vadd.f32 %v1049_v50, %v334_v21  ;;  %v499_v26 = vmax.f32 %v467_v18, 0.0  ;;  %v512_v29 = vmax.f32 %v480_v15, 0.0 }
  0xf7   :  { %v515_v27 = vmax.f32 %v483_v19, 0.0  ;;  %v497_v30 = vmax.f32 %v465_v22, 0.0 }
  0xf8   :  { %v513_v31 = vmax.f32 %v481_v23, 0.0  ;;  %v799_v32 = vpack.c.bf16 %v499_v26, %v498_v24 }
  0xf9   :  { %v839_v33 = vpack.c.bf16 %v515_v27, %v514_v25  ;;  %v794_v34 = vpack.c.bf16 %v497_v30, %v496_v28 }
  0xfa   :  { %v834_v35 = vpack.c.bf16 %v513_v31, %v512_v29  ;;  %847 = vst [vmem:[%s1134_s3 + $0x38] sm:$0xff] %v799_v32  }
  0xfb   :  { %855 = vst [vmem:[%s1134_s3 + $0x78] sm:$0xff] %v839_v33   ;;  %846 = vst [vmem:[%s1134_s3 + $0x30] sm:$0xff] %v794_v34  }
  0xfc   :  { %854 = vst [vmem:[%s1134_s3 + $0x70] sm:$0xff] %v834_v35  }

// kernel: top_down_baseline_forward.13
= control target key start
LH: loop header
LB: loop body
LE: loop exit
PB: predicated region body
PF: predicated region fallthrough
CT: control target
= control target key end

     0   :  { %s1358_s27 = smov 0   ;;  %s1529_s0 = inlined_call_operand.vmem [shape: bf16[4,64,128], index: 0, kind: input, shape index: {}]   ;;  %s1530_s1 = inlined_call_operand.vmem [shape: bf16[128,128], index: 1, kind: input, shape index: {}]   ;;  %s1531_s2 = inlined_call_operand.vmem [shape: f32[1,128], index: 2, kind: input, shape index: {}]   ;;  %s1532_s3 = inlined_call_operand.vmem [shape: f32[4,1,128], index: 3, kind: input, shape index: {}]   ;;  %s1533_s4 = inlined_call_operand.vmem [shape: bf16[128,128], index: 4, kind: input, shape index: {}]   ;;  %s1534_s5 = inlined_call_operand.vmem [shape: f32[1,128], index: 5, kind: input, shape index: {}]   ;;  %s1535_s6 = inlined_call_operand.vmem [shape: f32[4,1,128], index: 6, kind: input, shape index: {}]   ;;  %s1536_s7 = inlined_call_operand.vmem [shape: f32[4,1,128], index: 7, kind: output, shape index: {0}]   ;;  %s1537_s8 = inlined_call_operand.vmem [shape: f32[4,1,128], index: 8, kind: output, shape index: {1}]  }
   0x1 LB: > { %s1071_s28 = sadd.s32 4294967295, %s1308_s27   ;;  %p1075_p0 = scmp.ge.s32.totalorder %s1308_s27, 1  ;;  %s1308_s27 = sphi %s1358_s27, %s19_s27  }
   0x2   : > { %p287_p1 = scmp.lt.s32.totalorder %s1308_s27, 3 }
   0x4   : > { %p288_p2 = pnand %p1075_p0, %p287_p1 }
   0x5   : > { %v1270_v0 = vld [vmem:[%s1530_s1] sm:$0xff] (!%p288_p2)   ;;  %s1076_s9 = sshll.u32 (!%p288_p2), %s1071_s28, 1  ;;  %v1271_v1 = vld [vmem:[%s1530_s1 + $0x8] sm:$0xff] (!%p288_p2)   ;;  %v1272_v2 = vld [vmem:[%s1530_s1 + $0x10] sm:$0xff] (!%p288_p2)   ;;  %v1310_v16 = vmov (!%p288_p2), 0.0   ;;  %vm1311_vm0 = vmmov (!%p288_p2), 0  }
   0x6   : > { %291 = sbr.rel (%p288_p2) target bundleno = 1123 (0x463), region = 48  ;;  %p334_p3 = scmp.lt.s32.totalorder (!%p288_p2), %s1076_s9, 3  ;;  %1159 = vmatprep.subr.bf16.mxu0 (!%p288_p2), %v1270_v0  ;;  %v1273_v3 = vld [vmem:[%s1530_s1 + $0x18] sm:$0xff] (!%p288_p2)   ;;  %v1274_v5 = vld [vmem:[%s1530_s1 + $0x20] sm:$0xff] (!%p288_p2)   ;;  %v1275_v6 = vld [vmem:[%s1530_s1 + $0x28] sm:$0xff] (!%p288_p2)   ;;  %1191 = vmatprep.subr.bf16.mxu1 (!%p288_p2), %v1310_v16  ;;  %vm701_vm1 = vcmask (!%p288_p2), 516096  }
   0x7   : > { %1160 = vmatpush3.bf16.msra.mxu0 (!%p288_p2), %v1270_v0  ;;  %v1276_v7 = vld [vmem:[%s1530_s1 + $0x30] sm:$0xff] (!%p288_p2)   ;;  %v1277_v8 = vld [vmem:[%s1530_s1 + $0x38] sm:$0xff] (!%p288_p2)   ;;  %1199 = vmatprep.mubr.msk.bf16.mxu1 (!%p288_p2), %vm1311_vm0, %v1310_v16  ;;  %v1083_v17 = vld [vmem:[%s1531_s2] ss:$0 sm:$0xff] (!%p288_p2)  ;;  %vm724_vm2 = vcmask (!%p288_p2), 1040384   ;;  %vm729_vm3 = vcmask (!%p288_p2), 523264  }
   0x8   : > { %1161 = vmatprep.subr.bf16.mxu0 (!%p288_p2), %v1271_v1  ;;  %vm852_vm4 = vcmask (!%p288_p2), 1041409  }
   0xb   : > { %1162 = vmatpush3.bf16.msra.mxu0 (!%p288_p2), %v1271_v1 }
   0xc   : > { %1163 = vmatprep.subr.bf16.mxu0 (!%p288_p2), %v1272_v2 }
   0xd   : > { %s1539_s9 = smov (!%p334_p3, %s1076_s9), 3 }
   0xe   : > { %s1113_s14 = sshll.u32 %s1539_s9, 5  ;;  %s343_s12 = scalar_lea.vmem %s1532_s3, %s1539_s9 }
   0xf   : > { %s1381_s17 = scalar_lea.vmem %s1529_s0, %s1113_s14  ;;  %1164 = vmatpush3.bf16.msra.mxu0 %v1272_v2  ;;  %s353_s11 = scalar_lea.vmem %s1536_s7, %s1539_s9 }
  0x10   : > { %v1387_v4 = vld [vmem:[%s1381_s17] sm:$0xff]   ;;  %1165 = vmatprep.subr.bf16.mxu0 %v1273_v3  ;;  %v1403_v9 = vld [vmem:[%s1381_s17 + $0x8] sm:$0xff]   ;;  %v1406_v10 = vld [vmem:[%s1381_s17 + $0x10] sm:$0xff]   ;;  %s348_s16 = scalar_lea.vmem %s1535_s6, %s1539_s9  ;;  %s358_s19 = scalar_lea.vmem %s1537_s8, %s1539_s9 }
  0x11   : > { %1175 = vmatprep.mubr.bf16.mxu0 %v1387_v4  ;;  %v1411_v11 = vld [vmem:[%s1381_s17 + $0x18] sm:$0xff]   ;;  %v1414_v12 = vld [vmem:[%s1381_s17 + $0x20] sm:$0xff]   ;;  %v1419_v13 = vld [vmem:[%s1381_s17 + $0x28] sm:$0xff]  }
  0x12   : > { %v1422_v14 = vld [vmem:[%s1381_s17 + $0x30] sm:$0xff]   ;;  %v1427_v15 = vld [vmem:[%s1381_s17 + $0x38] sm:$0xff]  }
  0x13   : > { %1166 = vmatpush3.bf16.msra.mxu0 %v1273_v3 }
  0x14   : > { %1167 = vmatprep.subr.bf16.mxu0 %v1274_v5 }
  0x17   : > { %1168 = vmatpush3.bf16.msra.mxu0 %v1274_v5 }
  0x18   : > { %1169 = vmatprep.subr.bf16.mxu0 %v1275_v6 }
  0x1b   : > { %1170 = vmatpush3.bf16.msra.mxu0 %v1275_v6 }
  0x1c   : > { %1171 = vmatprep.subr.bf16.mxu0 %v1276_v7 }
  0x1f   : > { %1172 = vmatpush3.bf16.msra.mxu0 %v1276_v7 }
  0x20   : > { %1173 = vmatprep.subr.bf16.mxu0 %v1277_v8 }
  0x23   : > { %1174 = vmatpush3.bf16.msra.mxu0 %v1277_v8 }
  0x24   : > { %1203 = vmatprep.subr.bf16.mxu0 %v1310_v16 }
  0x26   : > { %1176 = vmatmul.mubr.bf16.vlgmr.msra.gmra.mrb[0].mxu0 %v1403_v9 }
  0x27   : > { %1179 = vmatprep.mubr.bf16.mxu0 %v1406_v10 }
  0x2e   : > { %1180 = vmatmul.mubr.bf16.gmra.mrb[4].mxu0 %v1411_v11 }
  0x2f   : > { %1183 = vmatprep.mubr.bf16.mxu0 %v1414_v12 }
  0x36   : > { %1184 = vmatmul.mubr.bf16.gmra.mrb[8].mxu0 %v1419_v13 }
  0x37   : > { %1187 = vmatprep.mubr.bf16.mxu0 %v1422_v14 }
  0x3e   : > { %1188 = vmatmul.mubr.bf16.gmra.mrb[12].mxu0 %v1427_v15 }
  0x3f   : > { %1211 = vmatprep.mubr.msk.bf16.mxu0 %vm1311_vm0, %v1310_v16 }
  0xf9   : > { %v1177_v18 = vpop.f32.mrb[0].mxu0 }
  0xfa   : > { %v539_v19 = vadd.f32 %v1177_v18, %v1083_v17  ;;  %v530_v20 = vpop.f32.mrb[1].mxu0 }
  0xfb   : > { %v531_v21 = vadd.f32 %v1083_v17, %v530_v20  ;;  %v1178_v22 = vpop.f32.mrb[2].mxu0  ;;  %v617_v20 = vld [vmem:[%s343_s12] sm:$0x1] }
  0xfc   : > { %v542_v23 = vadd.f32 %v1178_v22, %v1083_v17  ;;  %v533_v24 = vpop.f32.mrb[3].mxu0  ;;  %v595_v26 = vmax.f32 %v539_v19, 0.0 }
  0xfd   : > { %v534_v25 = vadd.f32 %v1083_v17, %v533_v24  ;;  %v593_v28 = vmax.f32 %v531_v21, 0.0  ;;  %v619_v21 = vpack.c.bf16 %v617_v20, %v617_v20  ;;  %v1102_v20 = vld [vmem:[%s1534_s5] ss:$0 sm:$0xff] }
  0xfe   : > { %v596_v27 = vmax.f32 %v542_v23, 0.0 }
  0xff   : > { %v594_v29 = vmax.f32 %v534_v25, 0.0 }
 0x100   : > { %v610_v30 = vpack.c.bf16 %v596_v27, %v595_v26 }
 0x101   : > { %v1181_v31 = vpop.f32.mrb[4].mxu0  ;;  %v609_v32 = vpack.c.bf16 %v594_v29, %v593_v28 }
 0x102   : > { %v555_v33 = vadd.f32 %v1181_v31, %v1083_v17  ;;  %v546_v34 = vpop.f32.mrb[5].mxu0 }
 0x103   : > { %v547_v35 = vadd.f32 %v1083_v17, %v546_v34  ;;  %v1182_v36 = vpop.f32.mrb[6].mxu0  ;;  %1192 = vmatpush3.bf16.xpose.msra.mxu1 %v609_v32 }
 0x104   : > { %v558_v37 = vadd.f32 %v1182_v36, %v1083_v17  ;;  %v549_v38 = vpop.f32.mrb[7].mxu0  ;;  %1193 = vmatprep.subr.bf16.mxu1 %v1310_v16  ;;  %v599_v40 = vmax.f32 %v555_v33, 0.0 }
 0x105   : > { %v550_v39 = vadd.f32 %v1083_v17, %v549_v38  ;;  %v597_v42 = vmax.f32 %v547_v35, 0.0 }
 0x106   : > { %v600_v41 = vmax.f32 %v558_v37, 0.0 }
 0x107   : > { %v598_v43 = vmax.f32 %v550_v39, 0.0 }
 0x108   : > { %v612_v44 = vpack.c.bf16 %v600_v41, %v599_v40 }
 0x109   : > { %v611_v45 = vpack.c.bf16 %v598_v43, %v597_v42  ;;  %v1185_v46 = vpop.f32.mrb[8].mxu0  ;;  %v1289_v42 = vld [vmem:[%s1533_s4 + $0x18] sm:$0xff]   ;;  %v1290_v43 = vld [vmem:[%s1533_s4 + $0x20] sm:$0xff]  }
 0x10a   : > { %v571_v47 = vadd.f32 %v1185_v46, %v1083_v17  ;;  %v562_v48 = vpop.f32.mrb[9].mxu0  ;;  %v1293_v46 = vld [vmem:[%s1533_s4 + $0x38] sm:$0xff]  }
 0x10b   : > { %v563_v49 = vadd.f32 %v1083_v17, %v562_v48  ;;  %v1186_v50 = vpop.f32.mrb[10].mxu0  ;;  %1194 = vmatpush3.bf16.xpose.msra.mxu1 %v610_v30 }
 0x10c   : > { %v574_v51 = vadd.f32 %v1186_v50, %v1083_v17  ;;  %v565_v52 = vpop.f32.mrb[11].mxu0  ;;  %1195 = vmatprep.subr.bf16.mxu1 %v1310_v16  ;;  %v603_v54 = vmax.f32 %v571_v47, 0.0 }
 0x10d   : > { %v566_v53 = vadd.f32 %v1083_v17, %v565_v52  ;;  %v601_v56 = vmax.f32 %v563_v49, 0.0 }
 0x10e   : > { %v604_v55 = vmax.f32 %v574_v51, 0.0 }
 0x10f   : > { %v602_v57 = vmax.f32 %v566_v53, 0.0 }
 0x110   : > { %v614_v58 = vpack.c.bf16 %v604_v55, %v603_v54 }
 0x111   : > { %v613_v59 = vpack.c.bf16 %v602_v57, %v601_v56  ;;  %v1189_v60 = vpop.f32.mrb[12].mxu0 }
 0x112   : > { %v587_v61 = vadd.f32 %v1189_v60, %v1083_v17  ;;  %v578_v62 = vpop.f32.mrb[13].mxu0 }
 0x113   : > { %1196 = vmatpush3.bf16.xpose.msra.mxu1 %v611_v45  ;;  %1204 = vmatpush3.bf16.xpose.msra.mxu0 %v613_v59  ;;  %v579_v63 = vadd.f32 %v1083_v17, %v578_v62  ;;  %v1190_v0 = vpop.f32.mrb[14].mxu0  ;;  %v1292_v45 = vld [vmem:[%s1533_s4 + $0x30] sm:$0xff]  }
 0x114   : > { %v607_v1 = vmax.f32 %v587_v61, 0.0  ;;  %v590_v2 = vadd.f32 %v1190_v0, %v1083_v17  ;;  %v581_v3 = vpop.f32.mrb[15].mxu0  ;;  %1197 = vmatprep.subr.bf16.mxu1 %v1310_v16  ;;  %1205 = vmatprep.subr.bf16.mxu0 %v1310_v16 }
 0x115   : > { %v605_v5 = vmax.f32 %v579_v63, 0.0  ;;  %v582_v6 = vadd.f32 %v1083_v17, %v581_v3  ;;  %v618_v17 = vld [vmem:[%s343_s12 + $0x1] sm:$0x1] }
 0x116   : > { %v608_v7 = vmax.f32 %v590_v2, 0.0 }
 0x117   : > { %v606_v8 = vmax.f32 %v582_v6, 0.0  ;;  %v1312_v6 = vmov 1966171168  }
 0x118   : > { %v616_v18 = vpack.c.bf16 %v608_v7, %v607_v1  ;;  %v946_v7 = vunpack.c.l.s4 %v1312_v6 }
 0x119   : > { %v615_v19 = vpack.c.bf16 %v606_v8, %v605_v5  ;;  %v948_v8 = vlaneseq }
 0x11b   : > { %1198 = vmatpush3.bf16.xpose.msra.mxu1 %v612_v44  ;;  %1206 = vmatpush3.bf16.xpose.msra.mxu0 %v614_v58  ;;  %v1291_v44 = vld [vmem:[%s1533_s4 + $0x28] sm:$0xff]  }
 0x11c   : > { %1207 = vmatprep.subr.bf16.mxu0 %v1310_v16  ;;  %1215 = vmatprep.subr.bf16.mxu1 %v1310_v16 }
 0x122   : > { %1200 = vmatmul.mubr.bf16.vlgmr.msra.gmra.mrb[0].mxu1 %v619_v21 }
 0x123   : > { %1208 = vmatpush3.bf16.xpose.msra.mxu0 %v615_v19  ;;  %1216 = vmatpush3.bf16.msra.mxu1 %v1387_v4  ;;  %v620_v4 = vpack.c.bf16 %v618_v17, %v618_v17  ;;  %v949_v19 = vshrl.u32 %v948_v8, 7 }
 0x124   : > { %1209 = vmatprep.subr.bf16.mxu0 %v1310_v16  ;;  %1217 = vmatprep.subr.bf16.mxu1 %v1310_v16 }
 0x125   : > { %1223 = vmatprep.mubr.msk.bf16.mxu1 %vm1311_vm0, %v1310_v16 }
 0x127   : > { %1218 = vmatpush3.bf16.msra.mxu1 %v1403_v9 }
 0x128   : > { %1219 = vmatprep.subr.bf16.mxu1 %v1310_v16 }
 0x12b   : > { %1210 = vmatpush3.bf16.xpose.msra.mxu0 %v616_v18  ;;  %1220 = vmatpush3.bf16.msra.mxu1 %v1406_v10  ;;  %v947_v18 = vunpack.c.0.s8 %v946_v7 }
 0x12c   : > { %1221 = vmatprep.subr.bf16.mxu1 %v1310_v16  ;;  %1239 = vmatprep.subr.bf16.mxu0 %v1310_v16 }
 0x12d   : > { %v950_v21 = vsub.s32 %v947_v18, %v949_v19 }
 0x12f   : > { %1222 = vmatpush3.bf16.msra.mxu1 %v1411_v11 }
 0x130   : > { %1227 = vmatprep.subr.bf16.mxu1 %v1310_v16 }
 0x132   : > { %1212 = vmatmul.mubr.bf16.vlgmr.msra.gmra.mrb[16].mxu0 %v620_v4 }
 0x133   : > { %1255 = vmatprep.mubr.msk.bf16.mxu0 %vm1311_vm0, %v1310_v16 }
 0x1f5   : > { %v655_v9 = vpop.f32.mrb[0].mxu1 }
 0x1f6   : > { %v1201_v22 = vpop.f32.mrb[1].mxu1  ;;  %v702_v23 = vsel %vm701_vm1, %v655_v9, -inf }
 0x1f7   : > { %703 = vmax.xlane.f32.xlu0 %v702_v23  ;;  %v658_v10 = vpop.f32.mrb[2].mxu1 }
 0x1f8   : > { %v1202_v24 = vpop.f32.mrb[3].mxu1 }
 0x1f9   : > { %v969_v24 = vld [vmem:[%s348_s16] sm:$0x1] }
 0x205   : > { %v695_v25 = vpop.f32.mrb[16].mxu0 }
 0x206   : > { %v1213_v26 = vpop.f32.mrb[17].mxu0  ;;  %v705_v27 = vsel %vm701_vm1, %v695_v25, -inf }
 0x207   : > { %v698_v28 = vpop.f32.mrb[18].mxu0  ;;  %706 = vmax.xlane.f32.xlu0 %v705_v27  ;;  %v970_v27 = vld [vmem:[%s348_s16 + $0x1] sm:$0x1] }
 0x208   : > { %v1214_v11 = vpop.f32.mrb[19].mxu0 }
 0x284   : > { %v704_v29 = vpop.xlane.xlu0 %703 }
 0x285   : > { %v708_v30 = vsub.f32 %v655_v9, %v704_v29 }
 0x287   : > { %v710_v31 = vmul.f32 1.442695, %v708_v30 }
 0x289   : > { %1294 = vpow2.f32 %v710_v31 }
 0x293   : > { %v1295_v32 = vpop.eup %1294 }
 0x294   : > { %v707_v33 = vpop.xlane.xlu0 %706  ;;  %v714_v34 = vsel %vm701_vm1, %v1295_v32, 0.0  ;;  %v725_v35 = vsel %vm724_vm2, %v1295_v32, 1.0 }
 0x295   : > { %v709_v36 = vsub.f32 %v695_v25, %v707_v33  ;;  %715 = vadd.xlane.f32.xlu1 %v714_v34  ;;  %v727_v37 = vpack.c.bf16 %v725_v35, %v725_v35 }
 0x297   : > { %v712_v38 = vmul.f32 1.442695, %v709_v36  ;;  %1224 = vmatmul.mubr.msk.bf16.vlgmr.msra.gmra.mrb[4].mxu1 %vm729_vm3, %v727_v37 }
 0x298   : > { %1228 = vmatpush3.bf16.msra.mxu1 %v1414_v12  ;;  %1235 = vmatprep.mubr.msk.bf16.mxu1 %vm1311_vm0, %v1310_v16 }
 0x299   : > { %1296 = vpow2.f32 %v712_v38  ;;  %1229 = vmatprep.subr.bf16.mxu1 %v1310_v16 }
 0x29c   : > { %1230 = vmatpush3.bf16.msra.mxu1 %v1419_v13  ;;  %v1286_v13 = vld [vmem:[%s1533_s4] sm:$0xff]  }
 0x29d   : > { %1231 = vmatprep.subr.bf16.mxu1 %v1310_v16  ;;  %1240 = vmatpush3.bf16.msra.mxu0 %v1286_v13 }
 0x29e   : > { %1241 = vmatprep.subr.bf16.mxu0 %v1310_v16 }
 0x2a0   : > { %1232 = vmatpush3.bf16.msra.mxu1 %v1422_v14  ;;  %v1287_v14 = vld [vmem:[%s1533_s4 + $0x8] sm:$0xff]  }
 0x2a1   : > { %1233 = vmatprep.subr.bf16.mxu1 %v1310_v16  ;;  %1242 = vmatpush3.bf16.msra.mxu0 %v1287_v14 }
 0x2a2   : > { %1243 = vmatprep.subr.bf16.mxu0 %v1310_v16 }
 0x2a3   : > { %v1297_v39 = vpop.eup %1296 }
 0x2a4   : > { %1234 = vmatpush3.bf16.msra.mxu1 %v1427_v15  ;;  %v717_v40 = vsel %vm701_vm1, %v1297_v39, 0.0  ;;  %v726_v12 = vsel %vm724_vm2, %v1297_v39, 1.0  ;;  %v1288_v15 = vld [vmem:[%s1533_s4 + $0x10] sm:$0xff]  }
 0x2a5   : > { %718 = vadd.xlane.f32.xlu1 %v717_v40  ;;  %v728_v41 = vpack.c.bf16 %v726_v12, %v726_v12  ;;  %1244 = vmatpush3.bf16.msra.mxu0 %v1288_v15 }
 0x2a6   : > { %1245 = vmatprep.subr.bf16.mxu0 %v1310_v16 }
 0x2a7   : > { %1236 = vmatmul.mubr.msk.bf16.vlgmr.msra.gmra.mrb[8].mxu1 %vm729_vm3, %v728_v41 }
 0x2a9   : > { %1246 = vmatpush3.bf16.msra.mxu0 %v1289_v42 }
 0x2aa   : > { %1247 = vmatprep.subr.bf16.mxu0 %v1310_v16 }
 0x2ad   : > { %1248 = vmatpush3.bf16.msra.mxu0 %v1290_v43 }
 0x2ae   : > { %1249 = vmatprep.subr.bf16.mxu0 %v1310_v16 }
 0x2b1   : > { %1250 = vmatpush3.bf16.msra.mxu0 %v1291_v44 }
 0x2b2   : > { %1251 = vmatprep.subr.bf16.mxu0 %v1310_v16 }
 0x2b5   : > { %1252 = vmatpush3.bf16.msra.mxu0 %v1292_v45 }
 0x2b6   : > { %1253 = vmatprep.subr.bf16.mxu0 %v1310_v16 }
 0x2b9   : > { %1254 = vmatpush3.bf16.msra.mxu0 %v1293_v46 }
 0x322   : > { %v716_v47 = vpop.xlane.xlu1 %715 }
 0x323   : > { %1298 = vrcp.f32 %v716_v47 }
 0x32d   : > { %v1299_v48 = vpop.eup %1298 }
 0x332   : > { %v719_v53 = vpop.xlane.xlu1 %718 }
 0x333   : > { %1300 = vrcp.f32 %v719_v53 }
 0x33d   : > { %v1301_v56 = vpop.eup %1300 }
 0x36a   : > { %v767_v49 = vpop.f32.mrb[4].mxu1 }
 0x36b   : > { %v816_v50 = vmul.f32 %v1299_v48, %v767_v49  ;;  %v1225_v51 = vpop.f32.mrb[5].mxu1  ;;  %v820_v16 = vmul.f32 0.015625, %v767_v49 }
 0x36c   : > { %v770_v52 = vpop.f32.mrb[6].mxu1 }
 0x36d   : > { %818 = vst [vmem:[%s353_s11] sm:$0x1] %v816_v50  ;;  %v1226_v54 = vpop.f32.mrb[7].mxu1  ;;  %v822_v55 = vpack.c.bf16 %v820_v16, %v820_v16 }
 0x36f   : > { %v849_v58 = vunpack.c.l.b16 %v822_v55 }
 0x371   : > { %v851_v1 = vrot.slane %v849_v58, 1 }
 0x37a   : > { %v810_v57 = vpop.f32.mrb[8].mxu1 }
 0x37b   : > { %v817_v59 = vmul.f32 %v1301_v56, %v810_v57  ;;  %v821_v60 = vmul.f32 0.015625, %v810_v57  ;;  %v1237_v61 = vpop.f32.mrb[9].mxu1 }
 0x37c   : > { %v813_v62 = vpop.f32.mrb[10].mxu1 }
 0x37d   : > { %819 = vst [vmem:[%s353_s11 + $0x1] sm:$0x1] %v817_v59  ;;  %v823_v63 = vpack.c.bf16 %v821_v60, %v821_v60  ;;  %v1238_v0 = vpop.f32.mrb[11].mxu1 }
 0x37f   : > { %v850_v2 = vunpack.c.l.b16 %v823_v63 }
 0x381   : > { %v853_v3 = vsel %vm852_vm4, %v850_v2, %v851_v1 }
 0x382   : > { %v854_v5 = vpack.c.b16 %v853_v3, %v853_v3 }
 0x384   : > { %1256 = vmatmul.mubr.bf16.vlgmr.msra.gmra.mrb[20].mxu0 %v854_v5 }
 0x457   : > { %v938_v17 = vpop.f32.mrb[20].mxu0 }
 0x458   : > { %v939_v4 = vadd.f32 %v1102_v20, %v938_v17  ;;  %v1257_v9 = vpop.f32.mrb[21].mxu0 }
 0x459   : > { %v941_v22 = vpop.f32.mrb[22].mxu0 }
 0x45a   : > { %v951_v23 = vrot.slane %v939_v4, %v950_v21  ;;  %v1258_v10 = vpop.f32.mrb[23].mxu0 }
 0x45c   : > { %v952_v25 = vcombine.high %v951_v23, %v951_v23  ;;  %v959_v26 = vrot.slane %v951_v23, %v950_v21 }
 0x45e   : > { %v966_v28 = vrot.slane %v952_v25, %v950_v21  ;;  %v971_v11 = vmul.f32 %v969_v24, %v959_v26 }
 0x460   : > { %v972_v29 = vmul.f32 %v970_v27, %v966_v28  ;;  %973 = vst [vmem:[%s358_s19] sm:$0x1] %v971_v11 }
 0x462   : > { %974 = vst [vmem:[%s358_s19 + $0x1] sm:$0x1] %v972_v29 }
 0x463 PF: > { %s19_s27 = sadd.s32 1, %s1308_s27  }
 0x464   : > { %p16_p4 = scmp.ge.s32.totalorder %s19_s27, 4  }
 0x466   :  { %18 = sbr.rel (!%p16_p4) target bundleno = 1 (0x1), region = 96 }

// kernel: top_down_baseline_forward.14
= control target key start
LH: loop header
LB: loop body
LE: loop exit
PB: predicated region body
PF: predicated region fallthrough
CT: control target
= control target key end

     0   :  { %v384_v0 = vmov 0.0   ;;  %vm385_vm0 = vmmov 0   ;;  %vm272_vm5 = vcmask 1043456   ;;  %s484_s2 = inlined_call_operand.vmem [shape: bf16[128,128], index: 2, kind: input, shape index: {}]   ;;  %s485_s4 = inlined_call_operand.vmem [shape: bf16[128,128], index: 4, kind: input, shape index: {}]   ;;  %s486_s0 = inlined_call_operand.vmem [shape: f32[4,128], index: 0, kind: input, shape index: {}]   ;;  %s487_s1 = inlined_call_operand.vmem [shape: f32[4,128], index: 1, kind: input, shape index: {}]   ;;  %s488_s3 = inlined_call_operand.vmem [shape: f32[1,128], index: 3, kind: input, shape index: {}]   ;;  %s489_s5 = inlined_call_operand.vmem [shape: f32[1,128], index: 5, kind: input, shape index: {}]   ;;  %s490_s6 = inlined_call_operand.vmem [shape: f32[4,128], index: 6, kind: output, shape index: {}]  }
   0x1   :  { %320 = vmatprep.subr.bf16.mxu0 %v384_v0  ;;  %340 = vmatprep.subr.bf16.mxu1 %v384_v0  ;;  %v362_v1 = vld [vmem:[%s484_s2] sm:$0xff]   ;;  %v364_v3 = vld [vmem:[%s484_s2 + $0x8] sm:$0xff]   ;;  %v366_v5 = vld [vmem:[%s484_s2 + $0x10] sm:$0xff]  }
   0x2   :  { %v363_v2 = vld [vmem:[%s485_s4] sm:$0xff]   ;;  %336 = vmatprep.mubr.msk.bf16.mxu0 %vm385_vm0, %v384_v0  ;;  %356 = vmatprep.mubr.msk.bf16.mxu1 %vm385_vm0, %v384_v0  ;;  %v365_v4 = vld [vmem:[%s485_s4 + $0x8] sm:$0xff]   ;;  %v367_v6 = vld [vmem:[%s485_s4 + $0x10] sm:$0xff]  }
   0x3   :  { %321 = vmatpush3.bf16.msra.mxu0 %v362_v1  ;;  %341 = vmatpush3.bf16.msra.mxu1 %v363_v2  ;;  %v368_v7 = vld [vmem:[%s484_s2 + $0x18] sm:$0xff]   ;;  %v370_v9 = vld [vmem:[%s484_s2 + $0x20] sm:$0xff]   ;;  %v372_v11 = vld [vmem:[%s484_s2 + $0x28] sm:$0xff]  }
   0x4   :  { %322 = vmatprep.subr.bf16.mxu0 %v384_v0  ;;  %342 = vmatprep.subr.bf16.mxu1 %v384_v0  ;;  %v369_v8 = vld [vmem:[%s485_s4 + $0x18] sm:$0xff]   ;;  %v371_v10 = vld [vmem:[%s485_s4 + $0x20] sm:$0xff]   ;;  %v373_v12 = vld [vmem:[%s485_s4 + $0x28] sm:$0xff]  }
   0x5   :  { %v374_v13 = vld [vmem:[%s484_s2 + $0x30] sm:$0xff]   ;;  %v376_v15 = vld [vmem:[%s484_s2 + $0x38] sm:$0xff]   ;;  %v24_v16 = vld [vmem:[%s486_s0] sm:$0xf] }
   0x6   :  { %v375_v14 = vld [vmem:[%s485_s4 + $0x30] sm:$0xff]   ;;  %v377_v17 = vld [vmem:[%s485_s4 + $0x38] sm:$0xff]   ;;  %v138_v18 = vld [vmem:[%s487_s1] sm:$0xf]  ;;  %v25_v19 = vpack.c.bf16 %v24_v16, %v24_v16 }
   0x7   :  { %323 = vmatpush3.bf16.msra.mxu0 %v364_v3  ;;  %343 = vmatpush3.bf16.msra.mxu1 %v365_v4  ;;  %v139_v20 = vpack.c.bf16 %v138_v18, %v138_v18  ;;  %v284_v21 = vld [vmem:[%s488_s3] ss:$0 sm:$0xff] }
   0x8   :  { %324 = vmatprep.subr.bf16.mxu0 %v384_v0  ;;  %344 = vmatprep.subr.bf16.mxu1 %v384_v0  ;;  %v293_v22 = vld [vmem:[%s489_s5] ss:$0 sm:$0xff] }
   0xb   :  { %325 = vmatpush3.bf16.msra.mxu0 %v366_v5  ;;  %345 = vmatpush3.bf16.msra.mxu1 %v367_v6 }
   0xc   :  { %326 = vmatprep.subr.bf16.mxu0 %v384_v0  ;;  %346 = vmatprep.subr.bf16.mxu1 %v384_v0 }
   0xf   :  { %327 = vmatpush3.bf16.msra.mxu0 %v368_v7  ;;  %347 = vmatpush3.bf16.msra.mxu1 %v369_v8 }
  0x10   :  { %328 = vmatprep.subr.bf16.mxu0 %v384_v0  ;;  %348 = vmatprep.subr.bf16.mxu1 %v384_v0 }
  0x13   :  { %329 = vmatpush3.bf16.msra.mxu0 %v370_v9  ;;  %349 = vmatpush3.bf16.msra.mxu1 %v371_v10 }
  0x14   :  { %330 = vmatprep.subr.bf16.mxu0 %v384_v0  ;;  %350 = vmatprep.subr.bf16.mxu1 %v384_v0 }
  0x17   :  { %331 = vmatpush3.bf16.msra.mxu0 %v372_v11  ;;  %351 = vmatpush3.bf16.msra.mxu1 %v373_v12 }
  0x18   :  { %332 = vmatprep.subr.bf16.mxu0 %v384_v0  ;;  %352 = vmatprep.subr.bf16.mxu1 %v384_v0 }
  0x1b   :  { %333 = vmatpush3.bf16.msra.mxu0 %v374_v13  ;;  %353 = vmatpush3.bf16.msra.mxu1 %v375_v14 }
  0x1c   :  { %334 = vmatprep.subr.bf16.mxu0 %v384_v0  ;;  %354 = vmatprep.subr.bf16.mxu1 %v384_v0 }
  0x1f   :  { %335 = vmatpush3.bf16.msra.mxu0 %v376_v15  ;;  %355 = vmatpush3.bf16.msra.mxu1 %v377_v17 }
  0x22   :  { %337 = vmatmul.mubr.bf16.vlgmr.msra.gmra.mrb[0].mxu0 %v25_v19  ;;  %357 = vmatmul.mubr.bf16.vlgmr.msra.gmra.mrb[0].mxu1 %v139_v20 }
  0xf5   :  { %v131_v23 = vpop.f32.mrb[0].mxu0  ;;  %v245_v25 = vpop.f32.mrb[0].mxu1 }
  0xf6   :  { %v132_v24 = vadd.f32 %v284_v21, %v131_v23  ;;  %v338_v26 = vpop.f32.mrb[1].mxu0  ;;  %v246_v27 = vadd.f32 %v293_v22, %v245_v25  ;;  %v358_v28 = vpop.f32.mrb[1].mxu1 }
  0xf7   :  { %v134_v29 = vpop.f32.mrb[2].mxu0  ;;  %v248_v31 = vpop.f32.mrb[2].mxu1 }
  0xf8   :  { %v137_v30 = vmax.f32 %v132_v24, 0.0  ;;  %v339_v32 = vpop.f32.mrb[3].mxu0  ;;  %v251_v33 = vmax.f32 %v246_v27, 0.0  ;;  %v359_v34 = vpop.f32.mrb[3].mxu1 }
  0xfa   :  { %v252_v35 = vmul.f32 %v251_v33, %v137_v30 }
  0xfc   :  { %v253_v36 = vmax.f32 %v252_v35, 0.0  ;;  %v261_v37 = vsub.f32 0.0, %v252_v35 }
  0xfe   :  { %v262_v38 = vmax.f32 %v261_v37, 0.0  ;;  %378 = vrsqrt.f32 %v253_v36  ;;  %vm256_vm1 = vcmp.eq.f32.partialorder %v253_v36, inf  ;;  %v259_v44 = vand.u32 2147483648, %v253_v36 }
  0xff   :  { %vm258_vm3 = vcmp.eq.f32.partialorder %v253_v36, 0.0 }
 0x100   :  { %380 = vrsqrt.f32 %v262_v38  ;;  %vm265_vm2 = vcmp.eq.f32.partialorder %v262_v38, inf  ;;  %v268_v45 = vand.u32 2147483648, %v262_v38  ;;  %vm267_vm4 = vcmp.eq.f32.partialorder %v262_v38, 0.0 }
 0x108   :  { %v379_v39 = vpop.eup %378 }
 0x109   :  { %v255_v40 = vmul.f32 %v379_v39, %v253_v36 }
 0x10a   :  { %v381_v41 = vpop.eup %380 }
 0x10b   :  { %v257_v42 = vsel %vm256_vm1, %v253_v36, %v255_v40  ;;  %v264_v43 = vmul.f32 %v381_v41, %v262_v38 }
 0x10c   :  { %v260_v47 = vsel %vm258_vm3, %v259_v44, %v257_v42 }
 0x10d   :  { %v266_v46 = vsel %vm265_vm2, %v262_v38, %v264_v43 }
 0x10e   :  { %v269_v48 = vsel %vm267_vm4, %v268_v45, %v266_v46 }
 0x10f   :  { %v270_v49 = vsub.f32 %v260_v47, %v269_v48 }
 0x111   :  { %v271_v50 = vmul.f32 %v270_v49, %v270_v49 }
 0x113   :  { %v273_v51 = vsel %vm272_vm5, %v271_v50, 0.0 }
 0x114   :  { %274 = vadd.xlane.f32.xlu0 %v273_v51 }
 0x1a1   :  { %v275_v52 = vpop.xlane.xlu0 %274 }
 0x1a2   :  { %v276_v53 = vmax.f32 %v275_v52, 1e-24 }
 0x1a4   :  { %382 = vrsqrt.f32 %v276_v53 }
 0x1ae   :  { %v383_v54 = vpop.eup %382 }
 0x1af   :  { %v278_v55 = vmul.f32 %v383_v54, %v270_v49 }
 0x1b1   :  { %279 = vst [vmem:[%s490_s6] sm:$0xf] %v278_v55 }

// kernel: top_down_baseline_forward.15
= control target key start
LH: loop header
LB: loop body
LE: loop exit
PB: predicated region body
PF: predicated region fallthrough
CT: control target
= control target key end

     0   :  { %v1329_v2 = vmov 0   ;;  %s1749_s0 = inlined_call_operand.vmem [shape: f32[4,128], index: 0, kind: input, shape index: {}]   ;;  %s1750_s1 = inlined_call_operand.vmem [shape: f32[4,128], index: 1, kind: input, shape index: {}]   ;;  %s1751_s2 = inlined_call_operand.vmem [shape: bf16[128,512], index: 2, kind: input, shape index: {}]   ;;  %s1752_s3 = inlined_call_operand.vmem [shape: bf16[128,512], index: 3, kind: input, shape index: {}]   ;;  %s1753_s4 = inlined_call_operand.vmem [shape: f32[1,512], index: 4, kind: input, shape index: {}]   ;;  %s1754_s5 = inlined_call_operand.vmem [shape: bf16[128,128], index: 5, kind: input, shape index: {}]   ;;  %s1755_s6 = inlined_call_operand.vmem [shape: f32[1,128], index: 6, kind: input, shape index: {}]   ;;  %s1756_s7 = inlined_call_operand.vmem [shape: bf16[128,256], index: 7, kind: input, shape index: {}]   ;;  %s1757_s8 = inlined_call_operand.vmem [shape: f32[1,256], index: 8, kind: input, shape index: {}]   ;;  %s1758_s9 = inlined_call_operand.hbm [shape: f32[4,256], index: 9, kind: output, shape index: {}]  }
   0x1   :  { %v1386_v0 = vld [vmem:[%s1751_s2 + $0x4] ss:$16 sps:$4 sm:$0xff]   ;;  %v1391_v1 = vld [vmem:[%s1751_s2] ss:$16 sps:$4 sm:$0xff]   ;;  %314 = vmatprep.mubr.bf16.mxu0 %v1329_v2  ;;  %354 = vmatprep.mubr.bf16.mxu1 %v1329_v2  ;;  %v1158_v6 = vld [vmem:[%s1751_s2 + $0xc] ss:$16 sps:$4 sm:$0xff]  }
   0x2   :  { %282 = vmatprep.subr.bf16.mxu0 %v1386_v0  ;;  %v1399_v3 = vld [vmem:[%s1751_s2 + $0x24] ss:$16 sps:$4 sm:$0xff]   ;;  %v1405_v4 = vld [vmem:[%s1751_s2 + $0x20] ss:$16 sps:$4 sm:$0xff]   ;;  %v1419_v7 = vld [vmem:[%s1751_s2 + $0x8] ss:$16 sps:$4 sm:$0xff]   ;;  %322 = vmatprep.subr.bf16.mxu1 %v1158_v6 }
   0x3   :  { %283 = vmatpush1.bf16.msra.mxu0 %v1391_v1  ;;  %v1410_v5 = vld [vmem:[%s1751_s2 + $0x44] ss:$16 sps:$4 sm:$0xff]   ;;  %v1424_v8 = vld [vmem:[%s1751_s2 + $0x40] ss:$16 sps:$4 sm:$0xff]   ;;  %323 = vmatpush1.bf16.msra.mxu1 %v1419_v7  ;;  %v1164_v9 = vld [vmem:[%s1751_s2 + $0x2c] ss:$16 sps:$4 sm:$0xff]  }
   0x4   :  { %284 = vmatprep.subr.bf16.mxu0 %v1399_v3  ;;  %v1166_v10 = vld [vmem:[%s1751_s2 + $0x28] ss:$16 sps:$4 sm:$0xff]   ;;  %v1438_v11 = vld [vmem:[%s1751_s2 + $0x64] ss:$16 sps:$4 sm:$0xff]   ;;  %324 = vmatprep.subr.bf16.mxu1 %v1164_v9  ;;  %v1443_v12 = vld [vmem:[%s1751_s2 + $0x60] ss:$16 sps:$4 sm:$0xff]  }
   0x5   :  { %v1170_v13 = vld [vmem:[%s1751_s2 + $0x4c] ss:$16 sps:$4 sm:$0xff]   ;;  %v1167_v14 = vld [vmem:[%s1751_s2 + $0x84] ss:$16 sps:$4 sm:$0xff]   ;;  %v1172_v15 = vld [vmem:[%s1751_s2 + $0x48] ss:$16 sps:$4 sm:$0xff]  }
   0x6   :  { %v1176_v16 = vld [vmem:[%s1751_s2 + $0x6c] ss:$16 sps:$4 sm:$0xff]   ;;  %v1169_v17 = vld [vmem:[%s1751_s2 + $0x80] ss:$16 sps:$4 sm:$0xff]   ;;  %v1173_v18 = vld [vmem:[%s1751_s2 + $0xa4] ss:$16 sps:$4 sm:$0xff]  }
   0x7   :  { %285 = vmatpush1.bf16.msra.mxu0 %v1405_v4  ;;  %325 = vmatpush1.bf16.msra.mxu1 %v1166_v10  ;;  %v1178_v19 = vld [vmem:[%s1751_s2 + $0x68] ss:$16 sps:$4 sm:$0xff]   ;;  %v1182_v20 = vld [vmem:[%s1751_s2 + $0x8c] ss:$16 sps:$4 sm:$0xff]   ;;  %v1175_v21 = vld [vmem:[%s1751_s2 + $0xa0] ss:$16 sps:$4 sm:$0xff]  }
   0x8   :  { %286 = vmatprep.subr.bf16.mxu0 %v1410_v5  ;;  %326 = vmatprep.subr.bf16.mxu1 %v1170_v13  ;;  %v1179_v22 = vld [vmem:[%s1751_s2 + $0xc4] ss:$16 sps:$4 sm:$0xff]   ;;  %v1184_v23 = vld [vmem:[%s1751_s2 + $0x88] ss:$16 sps:$4 sm:$0xff]   ;;  %v1188_v24 = vld [vmem:[%s1751_s2 + $0xac] ss:$16 sps:$4 sm:$0xff]  }
   0x9   :  { %v1181_v25 = vld [vmem:[%s1751_s2 + $0xc0] ss:$16 sps:$4 sm:$0xff]   ;;  %v1190_v26 = vld [vmem:[%s1751_s2 + $0xa8] ss:$16 sps:$4 sm:$0xff]   ;;  %v1185_v27 = vld [vmem:[%s1751_s2 + $0xe4] ss:$16 sps:$4 sm:$0xff]  }
   0xa   :  { %v1191_v28 = vld [vmem:[%s1751_s2 + $0xcc] ss:$16 sps:$4 sm:$0xff]   ;;  %v1187_v29 = vld [vmem:[%s1751_s2 + $0xe0] ss:$16 sps:$4 sm:$0xff]   ;;  %v1193_v31 = vld [vmem:[%s1751_s2 + $0xc8] ss:$16 sps:$4 sm:$0xff]  }
   0xb   :  { %287 = vmatpush1.bf16.msra.mxu0 %v1424_v8  ;;  %327 = vmatpush1.bf16.msra.mxu1 %v1172_v15  ;;  %v99_v30 = vld [vmem:[%s1749_s0] sm:$0xf]  ;;  %v1194_v32 = vld [vmem:[%s1751_s2 + $0xec] ss:$16 sps:$4 sm:$0xff]   ;;  %v1196_v33 = vld [vmem:[%s1751_s2 + $0xe8] ss:$16 sps:$4 sm:$0xff]  }
   0xc   :  { %288 = vmatprep.subr.bf16.mxu0 %v1438_v11  ;;  %328 = vmatprep.subr.bf16.mxu1 %v1176_v16  ;;  %v100_v34 = vpack.c.bf16 %v99_v30, %v99_v30 }
   0xf   :  { %289 = vmatpush1.bf16.msra.mxu0 %v1443_v12  ;;  %329 = vmatpush1.bf16.msra.mxu1 %v1178_v19 }
  0x10   :  { %290 = vmatprep.subr.bf16.mxu0 %v1167_v14  ;;  %330 = vmatprep.subr.bf16.mxu1 %v1182_v20 }
  0x13   :  { %291 = vmatpush1.bf16.msra.mxu0 %v1169_v17  ;;  %331 = vmatpush1.bf16.msra.mxu1 %v1184_v23 }
  0x14   :  { %292 = vmatprep.subr.bf16.mxu0 %v1173_v18  ;;  %332 = vmatprep.subr.bf16.mxu1 %v1188_v24 }
  0x17   :  { %293 = vmatpush1.bf16.msra.mxu0 %v1175_v21  ;;  %333 = vmatpush1.bf16.msra.mxu1 %v1190_v26 }
  0x18   :  { %294 = vmatprep.subr.bf16.mxu0 %v1179_v22  ;;  %334 = vmatprep.subr.bf16.mxu1 %v1191_v28 }
  0x1b   :  { %295 = vmatpush1.bf16.msra.mxu0 %v1181_v25  ;;  %335 = vmatpush1.bf16.msra.mxu1 %v1193_v31 }
  0x1c   :  { %296 = vmatprep.subr.bf16.mxu0 %v1185_v27  ;;  %336 = vmatprep.subr.bf16.mxu1 %v1194_v32 }
  0x1f   :  { %297 = vmatpush1.bf16.msra.mxu0 %v1187_v29  ;;  %337 = vmatpush1.bf16.msra.mxu1 %v1196_v33 }
  0x20   :  { %381 = vmatprep.subr.bf16.mxu0 %v1386_v0  ;;  %422 = vmatprep.subr.bf16.mxu1 %v1158_v6 }
  0x22   :  { %315 = vmatmul.mubr.bf16.vlgmr.msra.gmra.mrb[0].mxu0 %v100_v34  ;;  %355 = vmatmul.mubr.bf16.vlgmr.msra.gmra.mrb[0].mxu1 %v100_v34 }
  0x23   :  { %382 = vmatpush1.bf16.msra.mxu0 %v1391_v1  ;;  %413 = vmatprep.mubr.bf16.mxu0 %v1329_v2 }
  0x24   :  { %383 = vmatprep.subr.bf16.mxu0 %v1399_v3  ;;  %423 = vmatpush1.bf16.msra.mxu1 %v1419_v7 }
  0x25   :  { %424 = vmatprep.subr.bf16.mxu1 %v1164_v9  ;;  %454 = vmatprep.mubr.bf16.mxu1 %v1329_v2 }
  0x27   :  { %384 = vmatpush1.bf16.msra.mxu0 %v1405_v4 }
  0x28   :  { %385 = vmatprep.subr.bf16.mxu0 %v1410_v5  ;;  %425 = vmatpush1.bf16.msra.mxu1 %v1166_v10 }
  0x2b   :  { %386 = vmatpush1.bf16.msra.mxu0 %v1424_v8 }
  0x2c   :  { %14 = vsyncpa [#allocation3], 0  ;;  %426 = vmatprep.subr.bf16.mxu1 %v1170_v13  ;;  %387 = vmatprep.subr.bf16.mxu0 %v1438_v11  ;;  %v1199_v35 = vld [vmem:[%s1752_s3 + $0x4] ss:$16 sps:$4 sm:$0xff]   ;;  %v1202_v36 = vld [vmem:[%s1752_s3 + $0xc] ss:$16 sps:$4 sm:$0xff]   ;;  %v102_v6 = vlaneseq }
  0x2d   :  { %427 = vmatpush1.bf16.msra.mxu1 %v1172_v15  ;;  %v379_v37 = vld [vmem:[%s1750_s1] sm:$0xf]  ;;  %v1200_v39 = vld [vmem:[%s1752_s3 + $0x8] ss:$16 sps:$4 sm:$0xff]   ;;  %v1205_v41 = vld [vmem:[%s1752_s3 + $0x24] ss:$16 sps:$4 sm:$0xff]  }
  0x2e   :  { %428 = vmatprep.subr.bf16.mxu1 %v1176_v16  ;;  %v1197_v38 = vld [vmem:[%s1752_s3] ss:$16 sps:$4 sm:$0xff]   ;;  %v380_v40 = vpack.c.bf16 %v379_v37, %v379_v37  ;;  %v1208_v42 = vld [vmem:[%s1752_s3 + $0x2c] ss:$16 sps:$4 sm:$0xff]   ;;  %v1206_v44 = vld [vmem:[%s1752_s3 + $0x28] ss:$16 sps:$4 sm:$0xff]  }
  0x2f   :  { %388 = vmatpush1.bf16.msra.mxu0 %v1443_v12  ;;  %v1203_v43 = vld [vmem:[%s1752_s3 + $0x20] ss:$16 sps:$4 sm:$0xff]   ;;  %v1211_v45 = vld [vmem:[%s1752_s3 + $0x44] ss:$16 sps:$4 sm:$0xff]   ;;  %v1214_v46 = vld [vmem:[%s1752_s3 + $0x4c] ss:$16 sps:$4 sm:$0xff]  }
  0x30   :  { %389 = vmatprep.subr.bf16.mxu0 %v1167_v14  ;;  %v1209_v47 = vld [vmem:[%s1752_s3 + $0x40] ss:$16 sps:$4 sm:$0xff]   ;;  %v1212_v48 = vld [vmem:[%s1752_s3 + $0x48] ss:$16 sps:$4 sm:$0xff]   ;;  %v1217_v49 = vld [vmem:[%s1752_s3 + $0x64] ss:$16 sps:$4 sm:$0xff]  }
  0x31   :  { %429 = vmatpush1.bf16.msra.mxu1 %v1178_v19  ;;  %v1220_v50 = vld [vmem:[%s1752_s3 + $0x6c] ss:$16 sps:$4 sm:$0xff]   ;;  %v1215_v51 = vld [vmem:[%s1752_s3 + $0x60] ss:$16 sps:$4 sm:$0xff]   ;;  %v1218_v52 = vld [vmem:[%s1752_s3 + $0x68] ss:$16 sps:$4 sm:$0xff]  }
  0x32   :  { %430 = vmatprep.subr.bf16.mxu1 %v1182_v20  ;;  %v1223_v53 = vld [vmem:[%s1752_s3 + $0x84] ss:$16 sps:$4 sm:$0xff]   ;;  %v1226_v54 = vld [vmem:[%s1752_s3 + $0x8c] ss:$16 sps:$4 sm:$0xff]   ;;  %v1221_v55 = vld [vmem:[%s1752_s3 + $0x80] ss:$16 sps:$4 sm:$0xff]  }
  0x33   :  { %390 = vmatpush1.bf16.msra.mxu0 %v1169_v17  ;;  %v1224_v56 = vld [vmem:[%s1752_s3 + $0x88] ss:$16 sps:$4 sm:$0xff]   ;;  %v1229_v57 = vld [vmem:[%s1752_s3 + $0xa4] ss:$16 sps:$4 sm:$0xff]   ;;  %v1227_v58 = vld [vmem:[%s1752_s3 + $0xa0] ss:$16 sps:$4 sm:$0xff]  }
  0x34   :  { %391 = vmatprep.subr.bf16.mxu0 %v1173_v18  ;;  %v1230_v59 = vld [vmem:[%s1752_s3 + $0xa8] ss:$16 sps:$4 sm:$0xff]   ;;  %v1232_v60 = vld [vmem:[%s1752_s3 + $0xac] ss:$16 sps:$4 sm:$0xff]   ;;  %v1235_v61 = vld [vmem:[%s1752_s3 + $0xc4] ss:$16 sps:$4 sm:$0xff]  }
  0x35   :  { %431 = vmatpush1.bf16.msra.mxu1 %v1184_v23  ;;  %v1238_v62 = vld [vmem:[%s1752_s3 + $0xcc] ss:$16 sps:$4 sm:$0xff]   ;;  %v1233_v63 = vld [vmem:[%s1752_s3 + $0xc0] ss:$16 sps:$4 sm:$0xff]   ;;  %v1236_v0 = vld [vmem:[%s1752_s3 + $0xc8] ss:$16 sps:$4 sm:$0xff]  }
  0x36   :  { %432 = vmatprep.subr.bf16.mxu1 %v1188_v24  ;;  %v1241_v1 = vld [vmem:[%s1752_s3 + $0xe4] ss:$16 sps:$4 sm:$0xff]   ;;  %v1244_v3 = vld [vmem:[%s1752_s3 + $0xec] ss:$16 sps:$4 sm:$0xff]   ;;  %v1239_v4 = vld [vmem:[%s1752_s3 + $0xe0] ss:$16 sps:$4 sm:$0xff]  }
  0x37   :  { %392 = vmatpush1.bf16.msra.mxu0 %v1175_v21  ;;  %v1242_v5 = vld [vmem:[%s1752_s3 + $0xe8] ss:$16 sps:$4 sm:$0xff]   ;;  %v1623_v7 = vshrl.u32 %v102_v6, 7  ;;  %v1629_v9 = vld [vmem:[%s1753_s4] sm:$0xf]  ;;  %vm1331_vm0 = vmmov 0  }
  0x38   :  { %393 = vmatprep.subr.bf16.mxu0 %v1179_v22 }
  0x39   :  { %433 = vmatpush1.bf16.msra.mxu1 %v1190_v26  ;;  %v104_v8 = vsub.s32 0, %v1623_v7  ;;  %v116_v11 = vsub.s32 3, %v1623_v7  ;;  %v112_v24 = vsub.s32 2, %v1623_v7 }
  0x3a   :  { %434 = vmatprep.subr.bf16.mxu1 %v1191_v28 }
  0x3b   :  { %394 = vmatpush1.bf16.msra.mxu0 %v1181_v25  ;;  %v1634_v10 = vrot.slane %v1629_v9, %v104_v8  ;;  %v1639_v16 = vrot.slane %v1629_v9, %v116_v11  ;;  %v1644_v28 = vrot.slane %v1629_v9, %v112_v24 }
  0x3c   :  { %395 = vmatprep.subr.bf16.mxu0 %v1185_v27 }
  0x3d   :  { %435 = vmatpush1.bf16.msra.mxu1 %v1193_v31 }
  0x3e   :  { %436 = vmatprep.subr.bf16.mxu1 %v1194_v32 }
  0x3f   :  { %396 = vmatpush1.bf16.msra.mxu0 %v1187_v29 }
  0x40   :  { %624 = vmatprep.subr.bf16.mxu0 %v1199_v35 }
  0x41   :  { %437 = vmatpush1.bf16.msra.mxu1 %v1196_v33 }
  0x42   :  { %665 = vmatprep.subr.bf16.mxu1 %v1202_v36  ;;  %414 = vmatmul.mubr.bf16.vlgmr.msra.gmra.mrb[4].mxu0 %v380_v40 }
  0x43   :  { %625 = vmatpush1.bf16.msra.mxu0 %v1197_v38  ;;  %656 = vmatprep.mubr.bf16.mxu0 %v1329_v2 }
  0x44   :  { %455 = vmatmul.mubr.bf16.vlgmr.msra.gmra.mrb[4].mxu1 %v380_v40  ;;  %626 = vmatprep.subr.bf16.mxu0 %v1205_v41  ;;  %v1245_v41 = vld [vmem:[%s1754_s5] sm:$0xff]  }
  0x45   :  { %666 = vmatpush1.bf16.msra.mxu1 %v1200_v39  ;;  %697 = vmatprep.mubr.bf16.mxu1 %v1329_v2 }
  0x46   :  { %667 = vmatprep.subr.bf16.mxu1 %v1208_v42  ;;  %v1330_v42 = vmov 0.0  }
  0x47   :  { %627 = vmatpush1.bf16.msra.mxu0 %v1203_v43  ;;  %v1246_v43 = vld [vmem:[%s1754_s5 + $0x8] sm:$0xff]  }
  0x48   :  { %628 = vmatprep.subr.bf16.mxu0 %v1211_v45  ;;  %v1249_v45 = vld [vmem:[%s1754_s5 + $0x20] sm:$0xff]  }
  0x49   :  { %668 = vmatpush1.bf16.msra.mxu1 %v1206_v44  ;;  %v1247_v44 = vld [vmem:[%s1754_s5 + $0x10] sm:$0xff]  }
  0x4a   :  { %669 = vmatprep.subr.bf16.mxu1 %v1214_v46  ;;  %v1250_v46 = vld [vmem:[%s1754_s5 + $0x28] sm:$0xff]  }
  0x4b   :  { %629 = vmatpush1.bf16.msra.mxu0 %v1209_v47  ;;  %v1251_v47 = vld [vmem:[%s1754_s5 + $0x30] sm:$0xff]  }
  0x4c   :  { %630 = vmatprep.subr.bf16.mxu0 %v1217_v49  ;;  %v1253_v49 = vld [vmem:[%s1756_s7] ss:$8 sps:$4 sm:$0xff]  }
  0x4d   :  { %670 = vmatpush1.bf16.msra.mxu1 %v1212_v48  ;;  %v1252_v48 = vld [vmem:[%s1754_s5 + $0x38] sm:$0xff]  }
  0x4e   :  { %671 = vmatprep.subr.bf16.mxu1 %v1220_v50  ;;  %v1255_v50 = vld [vmem:[%s1756_s7 + $0x4] ss:$8 sps:$4 sm:$0xff]  }
  0x4f   :  { %631 = vmatpush1.bf16.msra.mxu0 %v1215_v51  ;;  %v1258_v51 = vld [vmem:[%s1756_s7 + $0x14] ss:$8 sps:$4 sm:$0xff]  }
  0x50   :  { %632 = vmatprep.subr.bf16.mxu0 %v1223_v53  ;;  %v1261_v53 = vld [vmem:[%s1756_s7 + $0x24] ss:$8 sps:$4 sm:$0xff]  }
  0x51   :  { %672 = vmatpush1.bf16.msra.mxu1 %v1218_v52  ;;  %v1256_v52 = vld [vmem:[%s1756_s7 + $0x10] ss:$8 sps:$4 sm:$0xff]  }
  0x52   :  { %673 = vmatprep.subr.bf16.mxu1 %v1226_v54  ;;  %v1259_v54 = vld [vmem:[%s1756_s7 + $0x20] ss:$8 sps:$4 sm:$0xff]  }
  0x53   :  { %633 = vmatpush1.bf16.msra.mxu0 %v1221_v55  ;;  %v1264_v55 = vld [vmem:[%s1756_s7 + $0x34] ss:$8 sps:$4 sm:$0xff]  }
  0x54   :  { %634 = vmatprep.subr.bf16.mxu0 %v1229_v57  ;;  %v1267_v57 = vld [vmem:[%s1756_s7 + $0x44] ss:$8 sps:$4 sm:$0xff]  }
  0x55   :  { %674 = vmatpush1.bf16.msra.mxu1 %v1224_v56  ;;  %v1262_v56 = vld [vmem:[%s1756_s7 + $0x30] ss:$8 sps:$4 sm:$0xff]  }
  0x56   :  { %675 = vmatprep.subr.bf16.mxu1 %v1232_v60  ;;  %v1268_v60 = vld [vmem:[%s1756_s7 + $0x50] ss:$8 sps:$4 sm:$0xff]  }
  0x57   :  { %635 = vmatpush1.bf16.msra.mxu0 %v1227_v58  ;;  %v1265_v58 = vld [vmem:[%s1756_s7 + $0x40] ss:$8 sps:$4 sm:$0xff]  }
  0x58   :  { %636 = vmatprep.subr.bf16.mxu0 %v1235_v61  ;;  %v1273_v61 = vld [vmem:[%s1756_s7 + $0x64] ss:$8 sps:$4 sm:$0xff]  }
  0x59   :  { %676 = vmatpush1.bf16.msra.mxu1 %v1230_v59  ;;  %v1270_v59 = vld [vmem:[%s1756_s7 + $0x54] ss:$8 sps:$4 sm:$0xff]  }
  0x5a   :  { %677 = vmatprep.subr.bf16.mxu1 %v1238_v62  ;;  %v1271_v62 = vld [vmem:[%s1756_s7 + $0x60] ss:$8 sps:$4 sm:$0xff]  }
  0x5b   :  { %637 = vmatpush1.bf16.msra.mxu0 %v1233_v63  ;;  %v108_v63 = vsub.s32 1, %v1623_v7 }
  0x5c   :  { %638 = vmatprep.subr.bf16.mxu0 %v1241_v1 }
  0x5d   :  { %678 = vmatpush1.bf16.msra.mxu1 %v1236_v0  ;;  %v109_v0 = vrot.slane %v1629_v9, %v108_v63 }
  0x5e   :  { %679 = vmatprep.subr.bf16.mxu1 %v1244_v3 }
  0x5f   :  { %639 = vmatpush1.bf16.msra.mxu0 %v1239_v4 }
  0x60   :  { %1113 = vmatprep.subr.bf16.mxu0 %v1330_v42 }
  0x61   :  { %680 = vmatpush1.bf16.msra.mxu1 %v1242_v5 }
  0x62   :  { %955 = vmatprep.subr.bf16.mxu1 %v1255_v50 }
  0xf5   :  { %v316_v12 = vpop.f32.mrb[0].mxu0  ;;  %v356_v19 = vpop.f32.mrb[0].mxu1 }
  0xf6   :  { %v317_v13 = vadd.f32 %v316_v12, %v1634_v10  ;;  %v318_v14 = vpop.f32.mrb[1].mxu0  ;;  %v358_v21 = vpop.f32.mrb[1].mxu1  ;;  %v357_v29 = vadd.f32 %v356_v19, %v1644_v28 }
  0xf7   :  { %v319_v15 = vpop.f32.mrb[2].mxu0  ;;  %v359_v22 = vadd.f32 %v358_v21, %v1639_v16  ;;  %v360_v23 = vpop.f32.mrb[2].mxu1 }
  0xf8   :  { %v363_v17 = vsub.f32 0.0, %v317_v13  ;;  %v320_v18 = vpop.f32.mrb[3].mxu0  ;;  %v361_v25 = vpop.f32.mrb[3].mxu1 }
  0xf9   :  { %v370_v26 = vsub.f32 0.0, %v359_v22 }
  0xfa   :  { %v364_v20 = vmul.f32 1.442695, %v363_v17 }
  0xfb   :  { %v371_v27 = vmul.f32 1.442695, %v370_v26 }
  0xfc   :  { %1277 = vpow2.f32 %v364_v20 }
  0xfd   :  { %1279 = vpow2.f32 %v371_v27 }
  0xfe   :  { %1281 = vtanh.f32 %v357_v29 }
 0x106   :  { %v1278_v30 = vpop.eup %1277 }
 0x107   :  { %v366_v31 = vadd.f32 1.0, %v1278_v30  ;;  %v1280_v32 = vpop.eup %1279 }
 0x108   :  { %v373_v33 = vadd.f32 1.0, %v1280_v32  ;;  %v1282_v34 = vpop.eup %1281 }
 0x109   :  { %1283 = vrcp.f32 %v366_v31 }
 0x10a   :  { %1285 = vrcp.f32 %v373_v33 }
 0x113   :  { %v1284_v35 = vpop.eup %1283 }
 0x114   :  { %v1647_v36 = vmul.f32 %v1284_v35, %v1282_v34  ;;  %v1286_v37 = vpop.eup %1285 }
 0x116   :  { %1287 = vtanh.f32 %v1647_v36 }
 0x120   :  { %v1288_v38 = vpop.eup %1287 }
 0x121   :  { %v378_v39 = vmul.f32 %v1288_v38, %v1286_v37 }
 0x123   :  { %v463_v40 = vpack.c.bf16 %v378_v39, %v378_v39  ;;  %v1276_v39 = vld [vmem:[%s1756_s7 + $0x74] ss:$8 sps:$4 sm:$0xff]  }
 0x125   :  { %657 = vmatmul.mubr.bf16.vlgmr.msra.gmra.mrb[4].mxu0 %v463_v40  ;;  %698 = vmatmul.mubr.bf16.vlgmr.msra.gmra.mrb[4].mxu1 %v463_v40  ;;  %v1274_v40 = vld [vmem:[%s1756_s7 + $0x70] ss:$8 sps:$4 sm:$0xff]   ;;  %s1332_s7 = smov [#allocation2]  }
 0x126   :  { %987 = vmatprep.mubr.bf16.mxu1 %v1329_v2  ;;  %1114 = vmatpush3.bf16.msra.mxu0 %v1245_v41  ;;  %v1248_v2 = vld [vmem:[%s1754_s5 + $0x18] sm:$0xff]  }
 0x127   :  { %1115 = vmatprep.subr.bf16.mxu0 %v1330_v42  ;;  %1129 = vmatprep.mubr.msk.bf16.mxu0 %vm1331_vm0, %v1330_v42 }
 0x128   :  { %956 = vmatpush1.bf16.msra.mxu1 %v1253_v49 }
 0x129   :  { %957 = vmatprep.subr.bf16.mxu1 %v1258_v51 }
 0x12a   :  { %1116 = vmatpush3.bf16.msra.mxu0 %v1246_v43 }
 0x12b   :  { %1117 = vmatprep.subr.bf16.mxu0 %v1330_v42 }
 0x12c   :  { %958 = vmatpush1.bf16.msra.mxu1 %v1256_v52 }
 0x12d   :  { %959 = vmatprep.subr.bf16.mxu1 %v1261_v53 }
 0x12e   :  { %1118 = vmatpush3.bf16.msra.mxu0 %v1247_v44 }
 0x12f   :  { %1119 = vmatprep.subr.bf16.mxu0 %v1330_v42 }
 0x130   :  { %960 = vmatpush1.bf16.msra.mxu1 %v1259_v54 }
 0x131   :  { %961 = vmatprep.subr.bf16.mxu1 %v1264_v55 }
 0x132   :  { %1120 = vmatpush3.bf16.msra.mxu0 %v1248_v2 }
 0x133   :  { %1121 = vmatprep.subr.bf16.mxu0 %v1330_v42 }
 0x134   :  { %962 = vmatpush1.bf16.msra.mxu1 %v1262_v56 }
 0x135   :  { %963 = vmatprep.subr.bf16.mxu1 %v1267_v57 }
 0x136   :  { %1122 = vmatpush3.bf16.msra.mxu0 %v1249_v45 }
 0x137   :  { %1123 = vmatprep.subr.bf16.mxu0 %v1330_v42 }
 0x138   :  { %964 = vmatpush1.bf16.msra.mxu1 %v1265_v58 }
 0x139   :  { %965 = vmatprep.subr.bf16.mxu1 %v1270_v59 }
 0x13a   :  { %1124 = vmatpush3.bf16.msra.mxu0 %v1250_v46  ;;  %v863_v46 = vld [vmem:[%s1757_s8] sm:$0x3] }
 0x13b   :  { %1125 = vmatprep.subr.bf16.mxu0 %v1330_v42 }
 0x13c   :  { %966 = vmatpush1.bf16.msra.mxu1 %v1268_v60 }
 0x13d   :  { %967 = vmatprep.subr.bf16.mxu1 %v1273_v61 }
 0x13e   :  { %1126 = vmatpush3.bf16.msra.mxu0 %v1251_v47  ;;  %v868_v47 = vrot.slane %v863_v46, %v104_v8 }
 0x13f   :  { %1127 = vmatprep.subr.bf16.mxu0 %v1330_v42 }
 0x140   :  { %968 = vmatpush1.bf16.msra.mxu1 %v1271_v62 }
 0x141   :  { %969 = vmatprep.subr.bf16.mxu1 %v1276_v39 }
 0x142   :  { %1128 = vmatpush3.bf16.msra.mxu0 %v1252_v48  ;;  %v872_v48 = vrot.slane %v863_v46, %v108_v63 }
 0x144   :  { %970 = vmatpush1.bf16.msra.mxu1 %v1274_v40 }
 0x1f8   :  { %v658_v1 = vpop.f32.mrb[4].mxu0  ;;  %v699_v3 = vpop.f32.mrb[4].mxu1 }
 0x1f9   :  { %v1133_v4 = vadd.f32 %v658_v1, %v1634_v10  ;;  %v660_v5 = vpop.f32.mrb[5].mxu0  ;;  %v701_v6 = vpop.f32.mrb[5].mxu1  ;;  %v1135_v23 = vadd.f32 %v699_v3, %v1644_v28 }
 0x1fa   :  { %v1134_v11 = vadd.f32 %v660_v5, %v109_v0  ;;  %v662_v12 = vpop.f32.mrb[6].mxu0  ;;  %v703_v13 = vpop.f32.mrb[6].mxu1  ;;  %v1136_v21 = vadd.f32 %v701_v6, %v1639_v16 }
 0x1fb   :  { %v710_v14 = vsub.f32 0.0, %v1133_v4  ;;  %v663_v15 = vpop.f32.mrb[7].mxu0  ;;  %v704_v17 = vpop.f32.mrb[7].mxu1 }
 0x1fc   :  { %v716_v18 = vsub.f32 0.0, %v1134_v11  ;;  %v723_v9 = vsub.f32 0.0, %v1136_v21 }
 0x1fd   :  { %v711_v19 = vmul.f32 1.442695, %v710_v14 }
 0x1fe   :  { %v717_v20 = vmul.f32 1.442695, %v716_v18  ;;  %v724_v22 = vmul.f32 1.442695, %v723_v9 }
 0x1ff   :  { %1289 = vpow2.f32 %v711_v19 }
 0x200   :  { %1291 = vpow2.f32 %v717_v20 }
 0x201   :  { %1293 = vpow2.f32 %v724_v22 }
 0x202   :  { %1295 = vtanh.f32 %v1135_v23 }
 0x209   :  { %v1290_v10 = vpop.eup %1289 }
 0x20a   :  { %v1292_v24 = vpop.eup %1291  ;;  %v713_v25 = vadd.f32 1.0, %v1290_v10 }
 0x20b   :  { %v719_v26 = vadd.f32 1.0, %v1292_v24  ;;  %v1294_v27 = vpop.eup %1293 }
 0x20c   :  { %1297 = vrcp.f32 %v713_v25  ;;  %v1296_v29 = vpop.eup %1295  ;;  %v726_v16 = vadd.f32 1.0, %v1294_v27 }
 0x20d   :  { %1299 = vrcp.f32 %v719_v26 }
 0x20e   :  { %1301 = vrcp.f32 %v726_v16 }
 0x216   :  { %v1298_v30 = vpop.eup %1297 }
 0x217   :  { %v1300_v31 = vpop.eup %1299  ;;  %v730_v32 = vmul.f32 %v1298_v30, %v1296_v29 }
 0x218   :  { %v729_v33 = vmul.f32 %v1300_v31, %v1647_v36  ;;  %v1302_v28 = vpop.eup %1301  ;;  %v1079_v36 = vld [vmem:[%s1755_s6] ss:$0 sm:$0xff]  ;;  %s1007_s6 = sshll.u32 %s1332_s7, 4  ;;  %s1008_s6 = int_to_ptr.vmem [resolvable:$true] %s1007_s6 }
 0x219   :  { %s1305_s27 = scalar_lea.vmem %s1008_s6, 128  ;;  %p1310_p1 = scmp.lt.s32.totalorder %s1008_s6, %s1008_s6 }
 0x21a   :  { %v731_v34 = vadd.f32 %v730_v32, %v729_v33  ;;  %p1306_p0 = scmp.ne.s32.totalorder %s1008_s6, %s1305_s27  ;;  %p1311_p2 = scmp.lt.s32.totalorder %s1305_s27, %s1305_s27 }
 0x21c   :  { %1303 = vtanh.f32 %v731_v34  ;;  %p1312_p3 = por %p1311_p2, %p1310_p1 }
 0x21e   :  { %p1313_p4 = pnand %p1312_p3, %p1306_p0 }
 0x226   :  { %v1304_v35 = vpop.eup %1303 }
 0x227   :  { %v733_v37 = vmul.f32 %v1304_v35, %v1302_v28 }
 0x229   :  { %v734_v38 = vpack.c.bf16 %v733_v37, %v733_v37 }
 0x22b   :  { %1130 = vmatmul.mubr.bf16.vlgmr.msra.gmra.mrb[8].mxu0 %v734_v38 }
 0x2fe   :  { %v840_v41 = vpop.f32.mrb[8].mxu0 }
 0x2ff   :  { %v841_v42 = vadd.f32 %v1079_v36, %v840_v41  ;;  %v1131_v43 = vpop.f32.mrb[9].mxu0 }
 0x300   :  { %v843_v44 = vpop.f32.mrb[10].mxu0 }
 0x301   :  { %v846_v2 = vpack.c.bf16 %v841_v42, %v841_v42  ;;  %v1132_v45 = vpop.f32.mrb[11].mxu0 }
 0x303   :  { %988 = vmatmul.mubr.bf16.vlgmr.msra.gmra.mrb[8].mxu1 %v846_v2 }
 0x3d6   :  { %v989_v49 = vpop.f32.mrb[8].mxu1 }
 0x3d7   :  { %v990_v50 = vadd.f32 %v989_v49, %v868_v47  ;;  %v991_v51 = vpop.f32.mrb[9].mxu1 }
 0x3d8   :  { %v992_v52 = vadd.f32 %v991_v51, %v872_v48  ;;  %v993_v53 = vpop.f32.mrb[10].mxu1 }
 0x3d9   :  { %v994_v54 = vpop.f32.mrb[11].mxu1 }
 0x3da   :  { %v998_v55 = vcombine.low %v990_v50, %v992_v52 }
 0x3dc   :  { %1000 = vst [vmem:[#allocation2] sm:$0xff] %v998_v55 }
 0x3dd   :  { %1316 = shalt.err (!%p1313_p4)
}
 0x3de   :  { %s1317_s3 = scalar_lea.hbm %s1758_s9, 128 }
 0x3df   :  { %p1318_p5 = scmp.ne.s32.totalorder %s1758_s9, %s1317_s3  ;;  %p1321_p6 = scmp.lt.u32.totalorder %s1317_s3, %s1758_s9 }
 0x3e1   :  { %p1323_p7 = pnand %p1321_p6, %p1318_p5 }
 0x3e3   :  { %1326 = shalt.err (!%p1323_p7)
}
 0x3e4   :  { %1010 = dma.vmem_to_hbm [thread:$0]  %s1008_s6, 128, %s1758_s9, [#allocation3]  }
 0x3e5   :  { %1327 = dma.done.wait [#allocation3], 128  }
 0x3e6   :  { %1328 = vsyncadd [#allocation3], 4294967168 }
 0x3e7   :  { %1014 = vsyncpa [#allocation3], 1 }

</bundles_post_ra>
